<compile_context>
chip_gen: v7x
topology: tpu7x:2x2x1
jax: 0.10.0
libtpu: 0.0.40
codegen_flags: <defaults>
</compile_context>

<pallas_src>
import functools

import numpy as np
import jax
import jax.numpy as jnp
from jax import lax
from jax.experimental import pallas as pl
from jax.experimental.pallas import tpu as pltpu


# ----------------------------- Pallas kernel --------------------------------
def map_attention_kernel(compute_dtype,
                         vlen_ref,                          # [B] int32 (SMEM, scalar prefetch)
                         q_ref, k_ref, v_ref,               # [Bb,Lq,D] f32, [Bb,Lk,D] cdt x2
                         sqw_ref, skwt_ref, wv_ref, wfc_ref,  # folded weights (cdt)
                         bfc_ref, gamma_ref, beta_ref,      # [1,D] f32
                         out_ref, attn_ref):                # [Bb,Lq,D] f32, [Bb,H,Lq,Lk] f32
    Bb, Lq, D = q_ref.shape
    Lk = k_ref.shape[1]
    H = skwt_ref.shape[0]
    dv = wv_ref.shape[1] // H
    low_precision = jnp.dtype(compute_dtype) == jnp.dtype(jnp.bfloat16)

    b0 = pl.program_id(0) * Bb                     # global batch offset of this block

    # Flatten (batch block, seq) so projections are single well-shaped matmuls.
    q_flat = q_ref[...].reshape(Bb * Lq, D)                  # f32 (also the residual)
    k_flat = k_ref[...].reshape(Bb * Lk, D)                  # compute_dtype
    v_flat = v_ref[...].reshape(Bb * Lk, D)                  # compute_dtype

    sq = jnp.dot(q_flat.astype(compute_dtype), sqw_ref[...],
                 preferred_element_type=jnp.float32)         # [Bb*Lq, H] q-scores
    sk_t = jnp.einsum('hd,nd->hn', skwt_ref[...], k_flat,
                      preferred_element_type=jnp.float32)    # [H, Bb*Lk] k-scores
    vp = jnp.dot(v_flat, wv_ref[...],
                 preferred_element_type=jnp.float32).astype(compute_dtype)  # [Bb*Lk, H*dv]
    wfc = wfc_ref[...]                                        # [H*dv, D]

    neg_big = jnp.float32(-1e10)
    key_idx = lax.broadcasted_iota(jnp.int32, (Lq, Lk), 1)   # in-kernel padding mask

    acc_rows = []
    # Small static unroll over batch elements / heads (Bb*H tiny, full LLO visibility).
    for b in range(Bb):
        pad = key_idx >= vlen_ref[b0 + b]                     # [Lq, Lk] True = masked key
        acc = jnp.zeros((Lq, D), jnp.float32)
        for h in range(H):
            # additive attention score: logits[i, j] = q_score[i, h] + k_score[h, j]
            logits = sq[b * Lq:(b + 1) * Lq, h:h + 1] + sk_t[h:h + 1, b * Lk:(b + 1) * Lk]
            logits = jnp.where(pad, neg_big, logits)          # masked_fill in f32 space

            # softmax over keys (f32 numerics, reciprocal-once normalization)
            m = jnp.max(logits, axis=-1, keepdims=True)
            p = jnp.exp(logits - m)
            denom = jnp.sum(p, axis=-1, keepdims=True)
            inv = pl.reciprocal(denom, approx=True) if low_precision else 1.0 / denom
            attn_h = p * inv                                   # [Lq, Lk]
            attn_ref[b, h] = attn_h
            # TODO(synk): attention dropout (p=0.1) is identity in eval mode; not modeled.

            ctx = jnp.dot(attn_h.astype(compute_dtype),
                          vp[b * Lk:(b + 1) * Lk, h * dv:(h + 1) * dv],
                          preferred_element_type=jnp.float32)  # [Lq, dv]
            # Split-fc accumulation (no lane concat). Fine while H*dv is tiny; at
            # production head counts use a [Lq, H*dv] scratch slab + one fused matmul.
            acc = acc + jnp.dot(ctx.astype(compute_dtype),
                                wfc[h * dv:(h + 1) * dv, :],
                                preferred_element_type=jnp.float32)  # [Lq, D]
        acc_rows.append(acc)

    # ---- fused epilogue over the whole batch block ----
    acc_all = jnp.concatenate(acc_rows, axis=0)               # [Bb*Lq, D]
    y = acc_all + bfc_ref[...]
    y = jnp.where(y >= 0.0, y, 0.2 * y)                       # LeakyReLU(0.2)
    # TODO(synk): output dropout (p=0.1) is identity in eval mode; not modeled.
    res = y + q_flat                                          # residual in f32

    mean = jnp.mean(res, axis=-1, keepdims=True)              # LayerNorm, eps=1e-5
    cen = res - mean
    var = jnp.mean(cen * cen, axis=-1, keepdims=True)
    normed = cen * lax.rsqrt(var + 1e-5) * gamma_ref[...] + beta_ref[...]
    out_ref[...] = normed.reshape(Bb, Lq, D)


# ------------------------------- wrapper -------------------------------------
def map_based_mha_forward(q, k, v, valid_len, params, *, block_b=2,
                          compute_dtype=jnp.float32):
    """q [B,Lq,D], k/v [B,Lk,D], valid_len [B] int32 (# of valid keys per batch elem).

    compute_dtype=jnp.bfloat16 enables the bf16 MXU-operand path (v6e/v7x)."""
    B, Lq, D = q.shape
    Lk = k.shape[1]
    H, dk, dv = params["n_head"], params["d_k"], params["d_v"]
    assert B % block_b == 0, "batch must divide the batch block"

    # Fold weight_map (Linear(2*dk, 1, bias=False)) into the q/k projections (exact).
    w_a = params["w_map"][0, :dk]            # multiplies the q half of cat([q, k])
    w_b = params["w_map"][0, dk:]            # multiplies the k half
    sqw = jnp.einsum('hkm,k->mh', params["w_q"].reshape(H, dk, D), w_a)     # [D, H]
    skw_t = jnp.einsum('hkm,k->hm', params["w_k"].reshape(H, dk, D), w_b)   # [H, D]
    wv_t = params["w_v"].T                                                   # [D, H*dv]
    wfc_t = params["w_fc"].T                                                 # [H*dv, D]
    bfc = params["b_fc"].reshape(1, D).astype(jnp.float32)
    gamma = params["ln_w"].reshape(1, D).astype(jnp.float32)
    beta = params["ln_b"].reshape(1, D).astype(jnp.float32)

    kernel = functools.partial(map_attention_kernel, compute_dtype)

    # All index_maps receive the scalar-prefetch ref as a trailing positional arg.
    in_specs = [
        pl.BlockSpec((block_b, Lq, D), lambda i, vl: (i, 0, 0)),     # q (f32)
        pl.BlockSpec((block_b, Lk, D), lambda i, vl: (i, 0, 0)),     # k (compute dtype)
        pl.BlockSpec((block_b, Lk, D), lambda i, vl: (i, 0, 0)),     # v (compute dtype)
        pl.BlockSpec((D, H), lambda i, vl: (0, 0)),                  # sqw   (resident)
        pl.BlockSpec((H, D), lambda i, vl: (0, 0)),                  # skw_t (resident)
        pl.BlockSpec((D, H * dv), lambda i, vl: (0, 0)),             # wv_t  (resident)
        pl.BlockSpec((H * dv, D), lambda i, vl: (0, 0)),             # wfc_t (resident)
        pl.BlockSpec((1, D), lambda i, vl: (0, 0)),                  # bfc
        pl.BlockSpec((1, D), lambda i, vl: (0, 0)),                  # gamma
        pl.BlockSpec((1, D), lambda i, vl: (0, 0)),                  # beta
    ]
    out_specs = (
        pl.BlockSpec((block_b, Lq, D), lambda i, vl: (i, 0, 0)),         # output
        pl.BlockSpec((block_b, H, Lq, Lk), lambda i, vl: (i, 0, 0, 0)),  # attn (contiguous)
    )

    out, attn = pl.pallas_call(
        kernel,
        out_shape=(jax.ShapeDtypeStruct((B, Lq, D), jnp.float32),
                   jax.ShapeDtypeStruct((B, H, Lq, Lk), jnp.float32)),
        grid_spec=pltpu.PrefetchScalarGridSpec(
            num_scalar_prefetch=1, grid=(B // block_b,),
            in_specs=in_specs, out_specs=out_specs),
        compiler_params=pltpu.CompilerParams(dimension_semantics=("parallel",)),
    )(valid_len.astype(jnp.int32),
      q.astype(jnp.float32),                       # residual path stays f32
      k.astype(compute_dtype), v.astype(compute_dtype),
      sqw.astype(compute_dtype), skw_t.astype(compute_dtype),
      wv_t.astype(compute_dtype), wfc_t.astype(compute_dtype),
      bfc, gamma, beta)

    # PyTorch layout: attn.view(n_head * B, Lq, Lk) with index h * B + b (XLA reorder).
    attn = jnp.transpose(attn, (1, 0, 2, 3)).reshape(H * B, Lq, Lk)
    return out, attn


# ------------------------- pure-JAX reference --------------------------------
def map_based_mha_reference(q, k, v, mask, params):
    """Literal transcription of the PyTorch forward (eval mode)."""
    H, dk, dv = params["n_head"], params["d_k"], params["d_v"]
    B, Lq, D = q.shape
    Lk = k.shape[1]

    Q = (q @ params["w_q"].T).reshape(B, Lq, H, dk)
    K = (k @ params["w_k"].T).reshape(B, Lk, H, dk)
    V = (v @ params["w_v"].T).reshape(B, Lk, H, dv)
    Qh = jnp.transpose(Q, (2, 0, 1, 3)).reshape(H * B, Lq, dk)
    Kh = jnp.transpose(K, (2, 0, 1, 3)).reshape(H * B, Lk, dk)
    Vh = jnp.transpose(V, (2, 0, 1, 3)).reshape(H * B, Lk, dv)

    q_exp = jnp.broadcast_to(Qh[:, :, None, :], (H * B, Lq, Lk, dk))
    k_exp = jnp.broadcast_to(Kh[:, None, :, :], (H * B, Lq, Lk, dk))
    qk = jnp.concatenate([q_exp, k_exp], axis=3)
    attn = jnp.einsum('bijc,c->bij', qk, params["w_map"][0])    # weight_map, no bias

    mask_rep = jnp.tile(mask, (H, 1, 1))
    attn = jnp.where(mask_rep, jnp.float32(-1e10), attn)
    attn = jax.nn.softmax(attn, axis=2)

    out = jnp.einsum('bij,bjd->bid', attn, Vh)                  # bmm
    out = out.reshape(H, B, Lq, dv).transpose(1, 2, 0, 3).reshape(B, Lq, H * dv)
    out = out @ params["w_fc"].T + params["b_fc"]
    out = jnp.where(out >= 0, out, 0.2 * out)                   # LeakyReLU(0.2)
    res = out + q
    mean = res.mean(-1, keepdims=True)
    var = ((res - mean) ** 2).mean(-1, keepdims=True)
    out = (res - mean) / jnp.sqrt(var + 1e-5) * params["ln_w"] + params["ln_b"]
    return out, attn


# ------------------------------ param init -----------------------------------
def init_params(key, n_head, d_model, d_k, d_v):
    ks = jax.random.split(key, 8)
    s_in = 1.0 / np.sqrt(d_model)               # nn.Linear default: U(-1/sqrt(fan_in), ...)
    s_map = 1.0 / np.sqrt(2 * d_k)
    s_fc_b = 1.0 / np.sqrt(n_head * d_v)
    xavier_std = np.sqrt(2.0 / (n_head * d_v + d_model))   # xavier_normal_ for fc weight
    return {
        "n_head": n_head, "d_k": d_k, "d_v": d_v,
        "w_q": jax.random.uniform(ks[0], (n_head * d_k, d_model), jnp.float32, -s_in, s_in),
        "w_k": jax.random.uniform(ks[1], (n_head * d_k, d_model), jnp.float32, -s_in, s_in),
        "w_v": jax.random.uniform(ks[2], (n_head * d_k, d_model), jnp.float32, -s_in, s_in),
        "w_map": jax.random.uniform(ks[3], (1, 2 * d_k), jnp.float32, -s_map, s_map),
        "w_fc": jax.random.normal(ks[4], (d_model, n_head * d_v), jnp.float32) * xavier_std,
        "b_fc": jax.random.uniform(ks[5], (d_model,), jnp.float32, -s_fc_b, s_fc_b),
        "ln_w": 1.0 + 0.1 * jax.random.normal(ks[6], (d_model,), jnp.float32),
        "ln_b": 0.1 * jax.random.normal(ks[7], (d_model,), jnp.float32),
    }


# --------------------------------- main ---------------------------------------
if __name__ == "__main__":
    n_head, d_model, d_k, d_v = 2, 64, 32, 32
    B, Lq, Lk = 4, 16, 16

    key = jax.random.PRNGKey(0)
    key_p, key_q, key_k, key_v = jax.random.split(key, 4)
    params = init_params(key_p, n_head, d_model, d_k, d_v)

    q = jax.random.normal(key_q, (B, Lq, d_model), jnp.float32)
    k = jax.random.normal(key_k, (B, Lk, d_model), jnp.float32)
    v = jax.random.normal(key_v, (B, Lk, d_model), jnp.float32)

    # key-padding mask: valid_len[b] valid keys, the rest masked out
    valid_len = jnp.array([16, 13, 10, 7], jnp.int32)
    mask = jnp.broadcast_to(jnp.arange(Lk)[None, None, :] >= valid_len[:, None, None],
                            (B, Lq, Lk))

    # --- f32 path (exact validation against the PyTorch-equivalent reference) ---
    out, attn = map_based_mha_forward(q, k, v, valid_len, params, block_b=2)
    out = jax.block_until_ready(out)
    attn = jax.block_until_ready(attn)

    out_ref, attn_ref = map_based_mha_reference(q, k, v, mask, params)
    assert out.shape == (B, Lq, d_model)
    assert attn.shape == (n_head * B, Lq, Lk)
    np.testing.assert_allclose(np.asarray(out), np.asarray(out_ref), rtol=2e-4, atol=2e-4)
    np.testing.assert_allclose(np.asarray(attn), np.asarray(attn_ref), rtol=2e-4, atol=2e-4)

    # --- bf16 MXU-operand path (v6e/v7x); softmax / LayerNorm stay f32 ---
    out_bf, attn_bf = map_based_mha_forward(q, k, v, valid_len, params, block_b=2,
                                            compute_dtype=jnp.bfloat16)
    out_bf = jax.block_until_ready(out_bf)
    attn_bf = jax.block_until_ready(attn_bf)
    np.testing.assert_allclose(np.asarray(out_bf), np.asarray(out_ref), rtol=5e-2, atol=5e-2)
    np.testing.assert_allclose(np.asarray(attn_bf), np.asarray(attn_ref), rtol=5e-2, atol=5e-2)

    print("KERNEL_OK")
</pallas_src>

<mosaic_0001>
module attributes {stable_mosaic.version = 11 : i64} {
  func.func @map_attention_kernel(%arg0: i32, %arg1: memref<4xi32, #tpu.memory_space<smem>>, %arg2: memref<2x16x64xf32, #tpu.memory_space<vmem>>, %arg3: memref<2x16x64xf32, #tpu.memory_space<vmem>>, %arg4: memref<2x16x64xf32, #tpu.memory_space<vmem>>, %arg5: memref<64x2xf32, #tpu.memory_space<vmem>>, %arg6: memref<2x64xf32, #tpu.memory_space<vmem>>, %arg7: memref<64x64xf32, #tpu.memory_space<vmem>>, %arg8: memref<64x64xf32, #tpu.memory_space<vmem>>, %arg9: memref<1x64xf32, #tpu.memory_space<vmem>>, %arg10: memref<1x64xf32, #tpu.memory_space<vmem>>, %arg11: memref<1x64xf32, #tpu.memory_space<vmem>>, %arg12: memref<2x16x64xf32, #tpu.memory_space<vmem>>, %arg13: memref<2x2x16x16xf32, #tpu.memory_space<vmem>>) attributes {dimension_semantics = [#tpu.dimension_semantics<parallel>], iteration_bounds = array<i64: 2>, scalar_prefetch = 1 : i64, scratch_operands = 0 : i64, tpu.core_type = #tpu.core_type<tc>, window_params = [{transform_indices = @transform_0, window_bounds = array<i64: 2, 16, 64>}, {transform_indices = @transform_1, window_bounds = array<i64: 2, 16, 64>}, {transform_indices = @transform_2, window_bounds = array<i64: 2, 16, 64>}, {pipeline_mode = #tpu.pipeline_mode<synchronous>, transform_indices = @transform_3, window_bounds = array<i64: 64, 2>}, {pipeline_mode = #tpu.pipeline_mode<synchronous>, transform_indices = @transform_4, window_bounds = array<i64: 2, 64>}, {pipeline_mode = #tpu.pipeline_mode<synchronous>, transform_indices = @transform_5, window_bounds = array<i64: 64, 64>}, {pipeline_mode = #tpu.pipeline_mode<synchronous>, transform_indices = @transform_6, window_bounds = array<i64: 64, 64>}, {pipeline_mode = #tpu.pipeline_mode<synchronous>, transform_indices = @transform_7, window_bounds = array<i64: 1, 64>}, {pipeline_mode = #tpu.pipeline_mode<synchronous>, transform_indices = @transform_8, window_bounds = array<i64: 1, 64>}, {pipeline_mode = #tpu.pipeline_mode<synchronous>, transform_indices = @transform_9, window_bounds = array<i64: 1, 64>}, {transform_indices = @transform_10, window_bounds = array<i64: 2, 16, 64>}, {transform_indices = @transform_11, window_bounds = array<i64: 2, 2, 16, 16>}]} {
    %c2_i32 = arith.constant 2 : i32
    %0 = arith.muli %arg0, %c2_i32 : i32
    %c0 = arith.constant 0 : index
    %c0_0 = arith.constant 0 : index
    %c0_1 = arith.constant 0 : index
    %1 = vector.load %arg2[%c0, %c0_0, %c0_1] : memref<2x16x64xf32, #tpu.memory_space<vmem>>, vector<2x16x64xf32>
    %2 = vector.shape_cast %1 : vector<2x16x64xf32> to vector<32x64xf32>
    %c0_2 = arith.constant 0 : index
    %c0_3 = arith.constant 0 : index
    %c0_4 = arith.constant 0 : index
    %3 = vector.load %arg3[%c0_2, %c0_3, %c0_4] : memref<2x16x64xf32, #tpu.memory_space<vmem>>, vector<2x16x64xf32>
    %4 = vector.shape_cast %3 : vector<2x16x64xf32> to vector<32x64xf32>
    %c0_5 = arith.constant 0 : index
    %c0_6 = arith.constant 0 : index
    %c0_7 = arith.constant 0 : index
    %5 = vector.load %arg4[%c0_5, %c0_6, %c0_7] : memref<2x16x64xf32, #tpu.memory_space<vmem>>, vector<2x16x64xf32>
    %6 = vector.shape_cast %5 : vector<2x16x64xf32> to vector<32x64xf32>
    %c0_8 = arith.constant 0 : index
    %c0_9 = arith.constant 0 : index
    %7 = vector.load %arg5[%c0_8, %c0_9] : memref<64x2xf32, #tpu.memory_space<vmem>>, vector<64x2xf32>
    %cst = arith.constant dense<0.000000e+00> : vector<32x2xf32>
    %8 = tpu.matmul %2, %7, %cst {dimension_numbers = #tpu.dot_dimension_numbers<[1], [0], [0], [1], [0, 0, 1, 1], [], []>} : vector<32x64xf32>, vector<64x2xf32>, vector<32x2xf32> -> vector<32x2xf32>
    %c0_10 = arith.constant 0 : index
    %c0_11 = arith.constant 0 : index
    %9 = vector.load %arg6[%c0_10, %c0_11] : memref<2x64xf32, #tpu.memory_space<vmem>>, vector<2x64xf32>
    "tpu.trace_start"() <{level = 10 : i32, message = "hd,nd->hn"}> : () -> ()
    %cst_12 = arith.constant dense<0.000000e+00> : vector<2x32xf32>
    %10 = tpu.matmul %9, %4, %cst_12 {dimension_numbers = #tpu.dot_dimension_numbers<[1], [1], [0], [0], [0, 0, 1, 0], [], []>} : vector<2x64xf32>, vector<32x64xf32>, vector<2x32xf32> -> vector<2x32xf32>
    "tpu.trace_stop"() : () -> ()
    %c0_13 = arith.constant 0 : index
    %c0_14 = arith.constant 0 : index
    %11 = vector.load %arg7[%c0_13, %c0_14] : memref<64x64xf32, #tpu.memory_space<vmem>>, vector<64x64xf32>
    %cst_15 = arith.constant dense<0.000000e+00> : vector<32x64xf32>
    %12 = tpu.matmul %6, %11, %cst_15 {dimension_numbers = #tpu.dot_dimension_numbers<[1], [0], [0], [1], [0, 0, 1, 1], [], []>} : vector<32x64xf32>, vector<64x64xf32>, vector<32x64xf32> -> vector<32x64xf32>
    %c0_16 = arith.constant 0 : index
    %c0_17 = arith.constant 0 : index
    %13 = vector.load %arg8[%c0_16, %c0_17] : memref<64x64xf32, #tpu.memory_space<vmem>>, vector<64x64xf32>
    %14 = tpu.iota {dimensions = array<i32: 1>} : vector<16x16xi32>
    %c0_i32 = arith.constant 0 : i32
    %15 = arith.addi %0, %c0_i32 : i32
    %16 = arith.index_cast %15 : i32 to index
    %17 = memref.load %arg1[%16] : memref<4xi32, #tpu.memory_space<smem>>
    %18 = vector.broadcast %17 : i32 to vector<16x16xi32>
    %19 = arith.cmpi sge, %14, %18 : vector<16x16xi32>
    %cst_18 = arith.constant 0.000000e+00 : f32
    %20 = vector.broadcast %cst_18 : f32 to vector<16x64xf32>
    %21 = vector.extract_strided_slice %8 {offsets = [0, 0], sizes = [16, 1], strides = [1, 1]} : vector<32x2xf32> to vector<16x1xf32>
    %22 = vector.extract_strided_slice %10 {offsets = [0, 0], sizes = [1, 16], strides = [1, 1]} : vector<2x32xf32> to vector<1x16xf32>
    %23 = vector.broadcast %21 : vector<16x1xf32> to vector<16x16xf32>
    %24 = vector.broadcast %22 : vector<1x16xf32> to vector<16x16xf32>
    %25 = arith.addf %23, %24 : vector<16x16xf32>
    %cst_19 = arith.constant -1.000000e+10 : f32
    %26 = vector.broadcast %cst_19 : f32 to vector<16x16xf32>
    %27 = arith.select %19, %26, %25 : vector<16x16xi1>, vector<16x16xf32>
    %cst_20 = arith.constant dense<0xFF800000> : vector<16xf32>
    %28 = vector.multi_reduction <maximumf>, %27, %cst_20 [1] : vector<16x16xf32> to vector<16xf32>
    %29 = vector.shape_cast %28 : vector<16xf32> to vector<16x1xf32>
    %30 = vector.broadcast %29 : vector<16x1xf32> to vector<16x16xf32>
    %31 = arith.subf %27, %30 : vector<16x16xf32>
    %32 = math.exp %31 : vector<16x16xf32>
    %cst_21 = arith.constant dense<0.000000e+00> : vector<16xf32>
    %33 = vector.multi_reduction <add>, %32, %cst_21 [1] : vector<16x16xf32> to vector<16xf32>
    %34 = vector.shape_cast %33 : vector<16xf32> to vector<16x1xf32>
    %cst_22 = arith.constant 1.000000e+00 : f32
    %35 = vector.broadcast %cst_22 : f32 to vector<16x1xf32>
    %36 = arith.divf %35, %34 : vector<16x1xf32>
    %37 = vector.broadcast %36 : vector<16x1xf32> to vector<16x16xf32>
    %38 = arith.mulf %32, %37 : vector<16x16xf32>
    %c0_23 = arith.constant 0 : index
    %c0_24 = arith.constant 0 : index
    %c0_25 = arith.constant 0 : index
    %c0_26 = arith.constant 0 : index
    %39 = vector.load %arg13[%c0_23, %c0_24, %c0_25, %c0_26] : memref<2x2x16x16xf32, #tpu.memory_space<vmem>>, vector<1x1x16x16xf32>
    %40 = vector.shape_cast %39 : vector<1x1x16x16xf32> to vector<16x16xf32>
    %41 = vector.shape_cast %38 : vector<16x16xf32> to vector<1x1x16x16xf32>
    tpu.vector_store %arg13[%c0_23, %c0_24, %c0_25, %c0_26], %41 {strides = array<i32>} : memref<2x2x16x16xf32, #tpu.memory_space<vmem>>, vector<1x1x16x16xf32>,
    %42 = vector.extract_strided_slice %12 {offsets = [0, 0], sizes = [16, 32], strides = [1, 1]} : vector<32x64xf32> to vector<16x32xf32>
    %cst_27 = arith.constant dense<0.000000e+00> : vector<16x32xf32>
    %43 = tpu.matmul %38, %42, %cst_27 {dimension_numbers = #tpu.dot_dimension_numbers<[1], [0], [0], [1], [0, 0, 1, 1], [], []>} : vector<16x16xf32>, vector<16x32xf32>, vector<16x32xf32> -> vector<16x32xf32>
    %44 = vector.extract_strided_slice %13 {offsets = [0, 0], sizes = [32, 64], strides = [1, 1]} : vector<64x64xf32> to vector<32x64xf32>
    %cst_28 = arith.constant dense<0.000000e+00> : vector<16x64xf32>
    %45 = tpu.matmul %43, %44, %cst_28 {dimension_numbers = #tpu.dot_dimension_numbers<[1], [0], [0], [1], [0, 0, 1, 1], [], []>} : vector<16x32xf32>, vector<32x64xf32>, vector<16x64xf32> -> vector<16x64xf32>
    %46 = arith.addf %20, %45 : vector<16x64xf32>
    %47 = vector.extract_strided_slice %8 {offsets = [0, 1], sizes = [16, 1], strides = [1, 1]} : vector<32x2xf32> to vector<16x1xf32>
    %48 = vector.extract_strided_slice %10 {offsets = [1, 0], sizes = [1, 16], strides = [1, 1]} : vector<2x32xf32> to vector<1x16xf32>
    %49 = vector.broadcast %47 : vector<16x1xf32> to vector<16x16xf32>
    %50 = vector.broadcast %48 : vector<1x16xf32> to vector<16x16xf32>
    %51 = arith.addf %49, %50 : vector<16x16xf32>
    %cst_29 = arith.constant -1.000000e+10 : f32
    %52 = vector.broadcast %cst_29 : f32 to vector<16x16xf32>
    %53 = arith.select %19, %52, %51 : vector<16x16xi1>, vector<16x16xf32>
    %cst_30 = arith.constant dense<0xFF800000> : vector<16xf32>
    %54 = vector.multi_reduction <maximumf>, %53, %cst_30 [1] : vector<16x16xf32> to vector<16xf32>
    %55 = vector.shape_cast %54 : vector<16xf32> to vector<16x1xf32>
    %56 = vector.broadcast %55 : vector<16x1xf32> to vector<16x16xf32>
    %57 = arith.subf %53, %56 : vector<16x16xf32>
    %58 = math.exp %57 : vector<16x16xf32>
    %cst_31 = arith.constant dense<0.000000e+00> : vector<16xf32>
    %59 = vector.multi_reduction <add>, %58, %cst_31 [1] : vector<16x16xf32> to vector<16xf32>
    %60 = vector.shape_cast %59 : vector<16xf32> to vector<16x1xf32>
    %cst_32 = arith.constant 1.000000e+00 : f32
    %61 = vector.broadcast %cst_32 : f32 to vector<16x1xf32>
    %62 = arith.divf %61, %60 : vector<16x1xf32>
    %63 = vector.broadcast %62 : vector<16x1xf32> to vector<16x16xf32>
    %64 = arith.mulf %58, %63 : vector<16x16xf32>
    %c0_33 = arith.constant 0 : index
    %c1 = arith.constant 1 : index
    %c0_34 = arith.constant 0 : index
    %c0_35 = arith.constant 0 : index
    %65 = vector.load %arg13[%c0_33, %c1, %c0_34, %c0_35] : memref<2x2x16x16xf32, #tpu.memory_space<vmem>>, vector<1x1x16x16xf32>
    %66 = vector.shape_cast %65 : vector<1x1x16x16xf32> to vector<16x16xf32>
    %67 = vector.shape_cast %64 : vector<16x16xf32> to vector<1x1x16x16xf32>
    tpu.vector_store %arg13[%c0_33, %c1, %c0_34, %c0_35], %67 {strides = array<i32>} : memref<2x2x16x16xf32, #tpu.memory_space<vmem>>, vector<1x1x16x16xf32>,
    %68 = vector.extract_strided_slice %12 {offsets = [0, 32], sizes = [16, 32], strides = [1, 1]} : vector<32x64xf32> to vector<16x32xf32>
    %cst_36 = arith.constant dense<0.000000e+00> : vector<16x32xf32>
    %69 = tpu.matmul %64, %68, %cst_36 {dimension_numbers = #tpu.dot_dimension_numbers<[1], [0], [0], [1], [0, 0, 1, 1], [], []>} : vector<16x16xf32>, vector<16x32xf32>, vector<16x32xf32> -> vector<16x32xf32>
    %70 = vector.extract_strided_slice %13 {offsets = [32, 0], sizes = [32, 64], strides = [1, 1]} : vector<64x64xf32> to vector<32x64xf32>
    %cst_37 = arith.constant dense<0.000000e+00> : vector<16x64xf32>
    %71 = tpu.matmul %69, %70, %cst_37 {dimension_numbers = #tpu.dot_dimension_numbers<[1], [0], [0], [1], [0, 0, 1, 1], [], []>} : vector<16x32xf32>, vector<32x64xf32>, vector<16x64xf32> -> vector<16x64xf32>
    %72 = arith.addf %46, %71 : vector<16x64xf32>
    %c1_i32 = arith.constant 1 : i32
    %73 = arith.addi %0, %c1_i32 : i32
    %74 = arith.index_cast %73 : i32 to index
    %75 = memref.load %arg1[%74] : memref<4xi32, #tpu.memory_space<smem>>
    %76 = vector.broadcast %75 : i32 to vector<16x16xi32>
    %77 = arith.cmpi sge, %14, %76 : vector<16x16xi32>
    %cst_38 = arith.constant 0.000000e+00 : f32
    %78 = vector.broadcast %cst_38 : f32 to vector<16x64xf32>
    %79 = vector.extract_strided_slice %8 {offsets = [16, 0], sizes = [16, 1], strides = [1, 1]} : vector<32x2xf32> to vector<16x1xf32>
    %80 = vector.extract_strided_slice %10 {offsets = [0, 16], sizes = [1, 16], strides = [1, 1]} : vector<2x32xf32> to vector<1x16xf32>
    %81 = vector.broadcast %79 : vector<16x1xf32> to vector<16x16xf32>
    %82 = vector.broadcast %80 : vector<1x16xf32> to vector<16x16xf32>
    %83 = arith.addf %81, %82 : vector<16x16xf32>
    %cst_39 = arith.constant -1.000000e+10 : f32
    %84 = vector.broadcast %cst_39 : f32 to vector<16x16xf32>
    %85 = arith.select %77, %84, %83 : vector<16x16xi1>, vector<16x16xf32>
    %cst_40 = arith.constant dense<0xFF800000> : vector<16xf32>
    %86 = vector.multi_reduction <maximumf>, %85, %cst_40 [1] : vector<16x16xf32> to vector<16xf32>
    %87 = vector.shape_cast %86 : vector<16xf32> to vector<16x1xf32>
    %88 = vector.broadcast %87 : vector<16x1xf32> to vector<16x16xf32>
    %89 = arith.subf %85, %88 : vector<16x16xf32>
    %90 = math.exp %89 : vector<16x16xf32>
    %cst_41 = arith.constant dense<0.000000e+00> : vector<16xf32>
    %91 = vector.multi_reduction <add>, %90, %cst_41 [1] : vector<16x16xf32> to vector<16xf32>
    %92 = vector.shape_cast %91 : vector<16xf32> to vector<16x1xf32>
    %cst_42 = arith.constant 1.000000e+00 : f32
    %93 = vector.broadcast %cst_42 : f32 to vector<16x1xf32>
    %94 = arith.divf %93, %92 : vector<16x1xf32>
    %95 = vector.broadcast %94 : vector<16x1xf32> to vector<16x16xf32>
    %96 = arith.mulf %90, %95 : vector<16x16xf32>
    %c1_43 = arith.constant 1 : index
    %c0_44 = arith.constant 0 : index
    %c0_45 = arith.constant 0 : index
    %c0_46 = arith.constant 0 : index
    %97 = vector.load %arg13[%c1_43, %c0_44, %c0_45, %c0_46] : memref<2x2x16x16xf32, #tpu.memory_space<vmem>>, vector<1x1x16x16xf32>
    %98 = vector.shape_cast %97 : vector<1x1x16x16xf32> to vector<16x16xf32>
    %99 = vector.shape_cast %96 : vector<16x16xf32> to vector<1x1x16x16xf32>
    tpu.vector_store %arg13[%c1_43, %c0_44, %c0_45, %c0_46], %99 {strides = array<i32>} : memref<2x2x16x16xf32, #tpu.memory_space<vmem>>, vector<1x1x16x16xf32>,
    %100 = vector.extract_strided_slice %12 {offsets = [16, 0], sizes = [16, 32], strides = [1, 1]} : vector<32x64xf32> to vector<16x32xf32>
    %cst_47 = arith.constant dense<0.000000e+00> : vector<16x32xf32>
    %101 = tpu.matmul %96, %100, %cst_47 {dimension_numbers = #tpu.dot_dimension_numbers<[1], [0], [0], [1], [0, 0, 1, 1], [], []>} : vector<16x16xf32>, vector<16x32xf32>, vector<16x32xf32> -> vector<16x32xf32>
    %102 = vector.extract_strided_slice %13 {offsets = [0, 0], sizes = [32, 64], strides = [1, 1]} : vector<64x64xf32> to vector<32x64xf32>
    %cst_48 = arith.constant dense<0.000000e+00> : vector<16x64xf32>
    %103 = tpu.matmul %101, %102, %cst_48 {dimension_numbers = #tpu.dot_dimension_numbers<[1], [0], [0], [1], [0, 0, 1, 1], [], []>} : vector<16x32xf32>, vector<32x64xf32>, vector<16x64xf32> -> vector<16x64xf32>
    %104 = arith.addf %78, %103 : vector<16x64xf32>
    %105 = vector.extract_strided_slice %8 {offsets = [16, 1], sizes = [16, 1], strides = [1, 1]} : vector<32x2xf32> to vector<16x1xf32>
    %106 = vector.extract_strided_slice %10 {offsets = [1, 16], sizes = [1, 16], strides = [1, 1]} : vector<2x32xf32> to vector<1x16xf32>
    %107 = vector.broadcast %105 : vector<16x1xf32> to vector<16x16xf32>
    %108 = vector.broadcast %106 : vector<1x16xf32> to vector<16x16xf32>
    %109 = arith.addf %107, %108 : vector<16x16xf32>
    %cst_49 = arith.constant -1.000000e+10 : f32
    %110 = vector.broadcast %cst_49 : f32 to vector<16x16xf32>
    %111 = arith.select %77, %110, %109 : vector<16x16xi1>, vector<16x16xf32>
    %cst_50 = arith.constant dense<0xFF800000> : vector<16xf32>
    %112 = vector.multi_reduction <maximumf>, %111, %cst_50 [1] : vector<16x16xf32> to vector<16xf32>
    %113 = vector.shape_cast %112 : vector<16xf32> to vector<16x1xf32>
    %114 = vector.broadcast %113 : vector<16x1xf32> to vector<16x16xf32>
    %115 = arith.subf %111, %114 : vector<16x16xf32>
    %116 = math.exp %115 : vector<16x16xf32>
    %cst_51 = arith.constant dense<0.000000e+00> : vector<16xf32>
    %117 = vector.multi_reduction <add>, %116, %cst_51 [1] : vector<16x16xf32> to vector<16xf32>
    %118 = vector.shape_cast %117 : vector<16xf32> to vector<16x1xf32>
    %cst_52 = arith.constant 1.000000e+00 : f32
    %119 = vector.broadcast %cst_52 : f32 to vector<16x1xf32>
    %120 = arith.divf %119, %118 : vector<16x1xf32>
    %121 = vector.broadcast %120 : vector<16x1xf32> to vector<16x16xf32>
    %122 = arith.mulf %116, %121 : vector<16x16xf32>
    %c1_53 = arith.constant 1 : index
    %c1_54 = arith.constant 1 : index
    %c0_55 = arith.constant 0 : index
    %c0_56 = arith.constant 0 : index
    %123 = vector.load %arg13[%c1_53, %c1_54, %c0_55, %c0_56] : memref<2x2x16x16xf32, #tpu.memory_space<vmem>>, vector<1x1x16x16xf32>
    %124 = vector.shape_cast %123 : vector<1x1x16x16xf32> to vector<16x16xf32>
    %125 = vector.shape_cast %122 : vector<16x16xf32> to vector<1x1x16x16xf32>
    tpu.vector_store %arg13[%c1_53, %c1_54, %c0_55, %c0_56], %125 {strides = array<i32>} : memref<2x2x16x16xf32, #tpu.memory_space<vmem>>, vector<1x1x16x16xf32>,
    %126 = vector.extract_strided_slice %12 {offsets = [16, 32], sizes = [16, 32], strides = [1, 1]} : vector<32x64xf32> to vector<16x32xf32>
    %cst_57 = arith.constant dense<0.000000e+00> : vector<16x32xf32>
    %127 = tpu.matmul %122, %126, %cst_57 {dimension_numbers = #tpu.dot_dimension_numbers<[1], [0], [0], [1], [0, 0, 1, 1], [], []>} : vector<16x16xf32>, vector<16x32xf32>, vector<16x32xf32> -> vector<16x32xf32>
    %128 = vector.extract_strided_slice %13 {offsets = [32, 0], sizes = [32, 64], strides = [1, 1]} : vector<64x64xf32> to vector<32x64xf32>
    %cst_58 = arith.constant dense<0.000000e+00> : vector<16x64xf32>
    %129 = tpu.matmul %127, %128, %cst_58 {dimension_numbers = #tpu.dot_dimension_numbers<[1], [0], [0], [1], [0, 0, 1, 1], [], []>} : vector<16x32xf32>, vector<32x64xf32>, vector<16x64xf32> -> vector<16x64xf32>
    %130 = arith.addf %104, %129 : vector<16x64xf32>
    %131 = tpu.concatenate %72, %130 in 0 : vector<16x64xf32>, vector<16x64xf32> -> vector<32x64xf32>
    %c0_59 = arith.constant 0 : index
    %c0_60 = arith.constant 0 : index
    %132 = vector.load %arg9[%c0_59, %c0_60] : memref<1x64xf32, #tpu.memory_space<vmem>>, vector<1x64xf32>
    %133 = vector.broadcast %132 : vector<1x64xf32> to vector<32x64xf32>
    %134 = arith.addf %131, %133 : vector<32x64xf32>
    %cst_61 = arith.constant 0.000000e+00 : f32
    %135 = vector.broadcast %cst_61 : f32 to vector<32x64xf32>
    %136 = arith.cmpf oge, %134, %135 : vector<32x64xf32>
    %cst_62 = arith.constant 2.000000e-01 : f32
    %137 = vector.broadcast %cst_62 : f32 to vector<32x64xf32>
    %138 = arith.mulf %137, %134 : vector<32x64xf32>
    %139 = arith.select %136, %134, %138 : vector<32x64xi1>, vector<32x64xf32>
    %140 = arith.addf %139, %2 : vector<32x64xf32>
    %cst_63 = arith.constant dense<0.000000e+00> : vector<32xf32>
    %141 = vector.multi_reduction <add>, %140, %cst_63 [1] : vector<32x64xf32> to vector<32xf32>
    %142 = vector.shape_cast %141 : vector<32xf32> to vector<32x1xf32>
    %cst_64 = arith.constant 6.400000e+01 : f32
    %143 = vector.broadcast %cst_64 : f32 to vector<32x1xf32>
    %144 = arith.divf %142, %143 : vector<32x1xf32>
    %145 = vector.broadcast %144 : vector<32x1xf32> to vector<32x64xf32>
    %146 = arith.subf %140, %145 : vector<32x64xf32>
    %147 = arith.mulf %146, %146 : vector<32x64xf32>
    %cst_65 = arith.constant dense<0.000000e+00> : vector<32xf32>
    %148 = vector.multi_reduction <add>, %147, %cst_65 [1] : vector<32x64xf32> to vector<32xf32>
    %149 = vector.shape_cast %148 : vector<32xf32> to vector<32x1xf32>
    %cst_66 = arith.constant 6.400000e+01 : f32
    %150 = vector.broadcast %cst_66 : f32 to vector<32x1xf32>
    %151 = arith.divf %149, %150 : vector<32x1xf32>
    %cst_67 = arith.constant 9.99999974E-6 : f32
    %152 = vector.broadcast %cst_67 : f32 to vector<32x1xf32>
    %153 = arith.addf %151, %152 : vector<32x1xf32>
    %154 = math.rsqrt %153 : vector<32x1xf32>
    %155 = vector.broadcast %154 : vector<32x1xf32> to vector<32x64xf32>
    %156 = arith.mulf %146, %155 : vector<32x64xf32>
    %c0_68 = arith.constant 0 : index
    %c0_69 = arith.constant 0 : index
    %157 = vector.load %arg10[%c0_68, %c0_69] : memref<1x64xf32, #tpu.memory_space<vmem>>, vector<1x64xf32>
    %158 = vector.broadcast %157 : vector<1x64xf32> to vector<32x64xf32>
    %159 = arith.mulf %156, %158 : vector<32x64xf32>
    %c0_70 = arith.constant 0 : index
    %c0_71 = arith.constant 0 : index
    %160 = vector.load %arg11[%c0_70, %c0_71] : memref<1x64xf32, #tpu.memory_space<vmem>>, vector<1x64xf32>
    %161 = vector.broadcast %160 : vector<1x64xf32> to vector<32x64xf32>
    %162 = arith.addf %159, %161 : vector<32x64xf32>
    %163 = vector.shape_cast %162 : vector<32x64xf32> to vector<2x16x64xf32>
    %c0_72 = arith.constant 0 : index
    %c0_73 = arith.constant 0 : index
    %c0_74 = arith.constant 0 : index
    %164 = vector.load %arg12[%c0_72, %c0_73, %c0_74] : memref<2x16x64xf32, #tpu.memory_space<vmem>>, vector<2x16x64xf32>
    tpu.vector_store %arg12[%c0_72, %c0_73, %c0_74], %163 {strides = array<i32>} : memref<2x16x64xf32, #tpu.memory_space<vmem>>, vector<2x16x64xf32>,
    return
  }
  func.func @transform_0(%arg0: i32, %arg1: memref<4xi32, #tpu.memory_space<smem>>) -> (i32, i32, i32) {
    %c0_i32 = arith.constant 0 : i32
    %c0_i32_0 = arith.constant 0 : i32
    %c0_i32_1 = arith.constant 0 : i32
    return %arg0, %c0_i32, %c0_i32_0 : i32, i32, i32
  }
  func.func @transform_1(%arg0: i32, %arg1: memref<4xi32, #tpu.memory_space<smem>>) -> (i32, i32, i32) {
    %c0_i32 = arith.constant 0 : i32
    %c0_i32_0 = arith.constant 0 : i32
    %c0_i32_1 = arith.constant 0 : i32
    return %arg0, %c0_i32, %c0_i32_0 : i32, i32, i32
  }
  func.func @transform_2(%arg0: i32, %arg1: memref<4xi32, #tpu.memory_space<smem>>) -> (i32, i32, i32) {
    %c0_i32 = arith.constant 0 : i32
    %c0_i32_0 = arith.constant 0 : i32
    %c0_i32_1 = arith.constant 0 : i32
    return %arg0, %c0_i32, %c0_i32_0 : i32, i32, i32
  }
  func.func @transform_3(%arg0: i32, %arg1: memref<4xi32, #tpu.memory_space<smem>>) -> (i32, i32) {
    %c0_i32 = arith.constant 0 : i32
    %c0_i32_0 = arith.constant 0 : i32
    %c0_i32_1 = arith.constant 0 : i32
    return %c0_i32, %c0_i32_0 : i32, i32
  }
  func.func @transform_4(%arg0: i32, %arg1: memref<4xi32, #tpu.memory_space<smem>>) -> (i32, i32) {
    %c0_i32 = arith.constant 0 : i32
    %c0_i32_0 = arith.constant 0 : i32
    %c0_i32_1 = arith.constant 0 : i32
    return %c0_i32, %c0_i32_0 : i32, i32
  }
  func.func @transform_5(%arg0: i32, %arg1: memref<4xi32, #tpu.memory_space<smem>>) -> (i32, i32) {
    %c0_i32 = arith.constant 0 : i32
    %c0_i32_0 = arith.constant 0 : i32
    %c0_i32_1 = arith.constant 0 : i32
    return %c0_i32, %c0_i32_0 : i32, i32
  }
  func.func @transform_6(%arg0: i32, %arg1: memref<4xi32, #tpu.memory_space<smem>>) -> (i32, i32) {
    %c0_i32 = arith.constant 0 : i32
    %c0_i32_0 = arith.constant 0 : i32
    %c0_i32_1 = arith.constant 0 : i32
    return %c0_i32, %c0_i32_0 : i32, i32
  }
  func.func @transform_7(%arg0: i32, %arg1: memref<4xi32, #tpu.memory_space<smem>>) -> (i32, i32) {
    %c0_i32 = arith.constant 0 : i32
    %c0_i32_0 = arith.constant 0 : i32
    %c0_i32_1 = arith.constant 0 : i32
    return %c0_i32, %c0_i32_0 : i32, i32
  }
  func.func @transform_8(%arg0: i32, %arg1: memref<4xi32, #tpu.memory_space<smem>>) -> (i32, i32) {
    %c0_i32 = arith.constant 0 : i32
    %c0_i32_0 = arith.constant 0 : i32
    %c0_i32_1 = arith.constant 0 : i32
    return %c0_i32, %c0_i32_0 : i32, i32
  }
  func.func @transform_9(%arg0: i32, %arg1: memref<4xi32, #tpu.memory_space<smem>>) -> (i32, i32) {
    %c0_i32 = arith.constant 0 : i32
    %c0_i32_0 = arith.constant 0 : i32
    %c0_i32_1 = arith.constant 0 : i32
    return %c0_i32, %c0_i32_0 : i32, i32
  }
  func.func @transform_10(%arg0: i32, %arg1: memref<4xi32, #tpu.memory_space<smem>>) -> (i32, i32, i32) {
    %c0_i32 = arith.constant 0 : i32
    %c0_i32_0 = arith.constant 0 : i32
    %c0_i32_1 = arith.constant 0 : i32
    return %arg0, %c0_i32, %c0_i32_0 : i32, i32, i32
  }
  func.func @transform_11(%arg0: i32, %arg1: memref<4xi32, #tpu.memory_space<smem>>) -> (i32, i32, i32, i32) {
    %c0_i32 = arith.constant 0 : i32
    %c0_i32_0 = arith.constant 0 : i32
    %c0_i32_1 = arith.constant 0 : i32
    %c0_i32_2 = arith.constant 0 : i32
    return %arg0, %c0_i32, %c0_i32_0, %c0_i32_1 : i32, i32, i32, i32
  }
}

</mosaic_0001>

<bundles_post_ra>
// kernel: tpu_custom_call.1
= control target key start
LH: loop header
LB: loop body
LE: loop exit
PB: predicated region body
PF: predicated region fallthrough
CT: control target
= control target key end

     0   :  { %s3410_s0 = inlined_call_operand.vmem [shape: s32[4], index: 0, kind: input, shape index: {}]   ;;  %s3411_s1 = inlined_call_operand.vmem [shape: f32[4,16,64], index: 1, kind: input, shape index: {}]   ;;  %s3412_s2 = inlined_call_operand.hbm [shape: f32[4,16,64], index: 2, kind: input, shape index: {}]   ;;  %s3413_s3 = inlined_call_operand.hbm [shape: f32[4,16,64], index: 3, kind: input, shape index: {}]   ;;  %s3414_s4 = inlined_call_operand.vmem [shape: f32[64,2], index: 4, kind: input, shape index: {}]   ;;  %s3415_s5 = inlined_call_operand.vmem [shape: f32[2,64], index: 5, kind: input, shape index: {}]   ;;  %s3416_s6 = inlined_call_operand.hbm [shape: f32[64,64], index: 6, kind: input, shape index: {}]   ;;  %s3417_s7 = inlined_call_operand.hbm [shape: f32[64,64], index: 7, kind: input, shape index: {}]   ;;  %s3418_s8 = inlined_call_operand.vmem [shape: f32[1,64], index: 8, kind: input, shape index: {}]   ;;  %s3419_s9 = inlined_call_operand.vmem [shape: f32[1,64], index: 9, kind: input, shape index: {}]   ;;  %s3420_s10 = inlined_call_operand.vmem [shape: f32[1,64], index: 10, kind: input, shape index: {}]   ;;  %s3421_s11 = inlined_call_operand.hbm [shape: f32[4,16,64], index: 11, kind: output, shape index: {0}]   ;;  %s3422_s12 = inlined_call_operand.hbm [shape: f32[4,2,16,16], index: 12, kind: output, shape index: {1}]  }
   0x1   :  { %3434 = sst [smem:[#allocation26_spill]] %s3412_s2  ;;  %s18_s23 = sshll.u32 %s3410_s0, 4  ;;  %s19_s23 = int_to_ptr.vmem [resolvable:$true] %s18_s23 }
   0x2   :  { %3435 = sst [smem:[#allocation27_spill]] %s3416_s6  ;;  %s2514_s24 = scalar_lea.vmem %s19_s23, 16 }
   0x3   :  { %3436 = sst [smem:[#allocation28_spill]] %s3417_s7  ;;  %p2515_p0 = scmp.ne.s32.totalorder %s19_s23, %s2514_s24 }
   0x4   :  { %3437 = sst [smem:[#allocation29_spill]] %s3421_s11  ;;  %p2519_p1 = scmp.lt.s32.totalorder %s19_s23, %s19_s23 }
   0x5   :  { %p2520_p2 = scmp.lt.s32.totalorder %s2514_s24, %s2514_s24 }
   0x7   :  { %p2521_p3 = por %p2520_p2, %p2519_p1 }
   0x9   :  { %p2522_p4 = pnand %p2521_p3, %p2515_p0 }
   0xb   :  { %2525 = shalt.err (!%p2522_p4)  }
   0xc   :  { %s2756_s25 = smov [#allocation3]  }
   0xd   :  { %21 = dma.vmem_to_smem %s19_s23, 16, %s2756_s25, [#allocation2] }
   0xe   :  { %2714 = dma.done.wait [#allocation2], 16 }
   0xf   :  { %2715 = vsyncadd [#allocation2], 4294967280 }
  0x10   :  { %23 = sfence }
  0x11   :  { %24 = vsyncpa [#allocation5], 0 }
  0x12   :  { %26 = vsyncpa [#allocation5 + $0x1], 0 }
  0x13   :  { %27 = vsyncpa [#allocation8], 0 }
  0x14   :  { %29 = vsyncpa [#allocation8 + $0x1], 0 }
  0x15   :  { %30 = vsyncpa [#allocation11], 0 }
  0x16   :  { %31 = vsyncpa [#allocation6], 0 }
  0x17   :  { %33 = vsyncpa [#allocation6 + $0x1], 0 }
  0x18   :  { %34 = vsyncpa [#allocation14], 0 }
  0x19   :  { %36 = vsyncpa [#allocation14 + $0x1], 0  ;;  %s2842_s0 = smov 0   ;;  %s2844_s26 = smov 0  }
  0x1a   :  { %s2846_s27 = smov 0   ;;  %s2848_s28 = smov 0  }
  0x1b LB: > { %3438 = sst [smem:[#allocation22_spill]] %s2742_s0  ;;  %s2863_s29 = sadd.s32 4294967295, %s2754_s28   ;;  %s2754_s28 = sphi %s2848_s28, %s3473_s28   ;;  %s2750_s27 = sphi %s2846_s27, %s3470_s27   ;;  %s2746_s26 = sphi %s2844_s26, %s3472_s26   ;;  %s2742_s0 = sphi %s2842_s0, %s3471_s0  }
  0x1c   : > { %3439 = sst [smem:[#allocation23_spill]] %s2750_s27  ;;  %s2001_s30 = sadd.s32 4294967294, %s2754_s28  }
  0x1d   : > { %p88_p5 = scmp.ne.s32.totalorder %s2746_s26, %s2742_s0  ;;  %p3423_p6 = scmp.eq.s32.totalorder %s2863_s29, 0 }
  0x1e   : > { %p291_p8 = scmp.eq.s32.totalorder %s2001_s30, 1  ;;  %p2002_p10 = scmp.ge.s32.totalorder %s2754_s28, 1 }
  0x1f   : > { %p2872_p9 = por %p3423_p6, %p88_p5  ;;  %p324_p12 = scmp.lt.s32.totalorder %s2754_s28, 3 }
  0x20   : > { %p2877_p11 = por %p291_p8, %p88_p5  ;;  %s2757_s16 = smov [#allocation9]  }
  0x21   : > { %s3440_s13 = scalar_select %p2872_p9, 1, 0 }
  0x22   : > { %s3441_s14 = scalar_select %p2877_p11, 1, 0 }
  0x23   : > { %p2882_p13 = pnand %p2002_p10, %p324_p12  ;;  %s342_s17 = sshll.u32 %s2757_s16, 4  ;;  %s2886_s17 = int_to_ptr.vmem [resolvable:$true] %s342_s17 }
  0x24   : > { %3442 = sst [smem:[#allocation24_spill]] %s3441_s14  ;;  %s2758_s19 = smov [#allocation10]  }
  0x25   : > { %p2386_p0 = pneg %p2882_p13  ;;  %s355_s20 = sshll.u32 %s2758_s19, 4  ;;  %s2897_s20 = int_to_ptr.vmem [resolvable:$true] %s355_s20 }
  0x26   : > { %s3445_s6 = sld [smem:[#allocation27_spill]] }
  0x27   : > { %p2893_p2 = pnand %p2386_p0, %p3423_p6 }
  0x29   : > { %p2528_p4 = pneg %p2893_p2 }
  0x2c   : > { %s2526_s23 = scalar_lea.hbm %s3445_s6, 1024 }
  0x2d   : > { %p2527_p3 = scmp.ne.s32.totalorder %s3445_s6, %s2526_s23  ;;  %p2533_p10 = scmp.lt.u32.totalorder %s2526_s23, %s3445_s6 }
  0x2f   : > { %p2529_p5 = pnand %p2528_p4, %p2527_p3 }
  0x31   : > { %p2530_p8 = pneg %p2529_p5 }
  0x33   : > { %p2535_p12 = pnand %p2533_p10, %p2530_p8 }
  0x35   : > { %2538 = shalt.err (!%p2535_p12)
}
  0x36   : > { %s2539_s19 = scalar_lea.vmem %s2886_s17, 1024  ;;  %p2547_p7 = scmp.lt.s32.totalorder %s2886_s17, %s2886_s17 }
  0x37   : > { %p2540_p0 = scmp.ne.s32.totalorder %s2886_s17, %s2539_s19  ;;  %p2548_p3 = scmp.lt.s32.totalorder %s2539_s19, %s2539_s19 }
  0x39   : > { %p2542_p1 = pnand %p2540_p0, %p2528_p4  ;;  %p2549_p5 = por %p2548_p3, %p2547_p7 }
  0x3b   : > { %p2543_p6 = pneg %p2542_p1 }
  0x3d   : > { %p2550_p11 = pnand %p2549_p5, %p2543_p6 }
  0x3f   : > { %2553 = shalt.err (!%p2550_p11)
}
  0x40   : > { %s3427_s21 = smov 128   ;;  %s3429_s22 = smov 8  }
  0x41   : > { %2389 = dma.hbm_to_vmem [thread:$0]  (!%p2893_p2), %s3445_s6, 1024, %s2886_s17, [#allocation8], %s3427_s21, %s3427_s21, %s3429_s22  }
  0x42   : > { %s3446_s7 = sld [smem:[#allocation28_spill]] }
  0x48   : > { %s2554_s16 = scalar_lea.hbm %s3446_s7, 1024 }
  0x49   : > { %p2555_p6 = scmp.ne.s32.totalorder %s3446_s7, %s2554_s16  ;;  %p2561_p1 = scmp.lt.u32.totalorder %s2554_s16, %s3446_s7 }
  0x4b   : > { %p2557_p7 = pnand %p2555_p6, %p2528_p4 }
  0x4d   : > { %p2558_p11 = pneg %p2557_p7 }
  0x4f   : > { %p2563_p8 = pnand %p2561_p1, %p2558_p11 }
  0x51   : > { %2566 = shalt.err (!%p2563_p8)
}
  0x52   : > { %s2567_s17 = scalar_lea.vmem %s2897_s20, 1024  ;;  %p2575_p3 = scmp.lt.s32.totalorder %s2897_s20, %s2897_s20 }
  0x53   : > { %p2568_p10 = scmp.ne.s32.totalorder %s2897_s20, %s2567_s17  ;;  %p2576_p5 = scmp.lt.s32.totalorder %s2567_s17, %s2567_s17 }
  0x55   : > { %p2570_p12 = pnand %p2568_p10, %p2528_p4  ;;  %p2577_p6 = por %p2576_p5, %p2575_p3 }
  0x57   : > { %p2571_p0 = pneg %p2570_p12 }
  0x59   : > { %p2578_p7 = pnand %p2577_p6, %p2571_p0 }
  0x5b   : > { %2581 = shalt.err (!%p2578_p7)
}
  0x5c   : > { %2392 = dma.hbm_to_vmem [thread:$0]  (!%p2893_p2), %s3446_s7, 1024, %s2897_s20, [#allocation11], %s3427_s21, %s3427_s21, %s3429_s22  }
  0x5d   : > { %s2958_s14 = sadd.s32 1, %s2754_s28   ;;  %s75_s18 = sadd.s32 1, %s2750_s27 }
  0x5e   : > { %s72_s23 = ssub.s32 %s2754_s28, %s2958_s14  ;;  %p82_p4 = scmp.ne.s32.totalorder %s2750_s27, %s2746_s26 }
  0x5f   : > { %p73_p11 = scmp.eq.s32.totalorder %s72_s23, 0  ;;  %p83_p1 = scmp.eq.s32.totalorder %s2754_s28, 0 }
  0x60   : > { %p3447_p8 = scmp.eq.s32.totalorder %s2863_s29, 1  ;;  %p2409_p12 = scmp.lt.s32.totalorder %s2754_s28, 2 }
  0x61   : > { %s2974_s25 = scalar_select %p73_p11, %s2750_s27, %s75_s18  }
  0x62   : > { %p2968_p10 = por %p3447_p8, %p82_p4  ;;  %p84_p0 = por %p83_p1, %p82_p4 }
  0x63   : > { %3449 = sst [smem:[#allocation25_spill]] %s2974_s25  ;;  %s388_s30 = sand.u32 1, %s2750_s27  }
  0x64   : > { %s3448_s24 = scalar_select %p2968_p10, 1, 0 }
  0x65   : > { %s2006_s16 = sshll.u32 %s388_s30, 5  ;;  %s2074_s20 = sshll.u32 %s2754_s28, 9 }
  0x66   : > { %s3450_s2 = sld [smem:[#allocation26_spill]]  ;;  %s392_s0 = scalar_lea.vmem [#allocation4], %s2006_s16 }
  0x67   : > { %s400_s23 = sshll.u32 %s392_s0, 4  ;;  %p2985_p2 = pnand %p2409_p12, %p84_p0  ;;  %s2983_s23 = int_to_ptr.vmem [resolvable:$true] %s400_s23 }
  0x68   : > { %s2992_s19 = scalar_lea.hbm %s3413_s3, %s2074_s20  ;;  %s414_s17 = scalar_lea.vmem [#allocation7], %s2006_s16 }
  0x69   : > { %s2994_s6 = sshll.u32 %s414_s17, 4  ;;  %s2996_s7 = scalar_lea.sflag [#allocation5], %s388_s30  ;;  %s3028_s6 = int_to_ptr.vmem [resolvable:$true] %s2994_s6 }
  0x6a   : > { %p2584_p5 = pneg %p2985_p2 }
  0x6c   : > { %s2981_s11 = scalar_lea.hbm %s3450_s2, %s2074_s20  ;;  %s2587_s21 = scalar_lea.hbm %s3450_s2, 1024 }
  0x6d   : > { %s2582_s0 = scalar_lea.hbm %s2981_s11, 512  ;;  %p2588_p4 = scmp.lt.u32.totalorder %s2981_s11, %s3450_s2 }
  0x6e   : > { %p2583_p3 = scmp.ne.s32.totalorder %s2981_s11, %s2582_s0  ;;  %p2589_p11 = scmp.lt.u32.totalorder %s2587_s21, %s2582_s0 }
  0x6f   : > { %p2591_p8 = scmp.lt.u32.totalorder %s2582_s0, %s2981_s11 }
  0x70   : > { %p2585_p6 = pnand %p2584_p5, %p2583_p3  ;;  %p2590_p1 = por %p2589_p11, %p2588_p4 }
  0x72   : > { %p2586_p7 = pneg %p2585_p6  ;;  %p2592_p12 = por %p2591_p8, %p2590_p1 }
  0x74   : > { %p2593_p0 = pnand %p2592_p12, %p2586_p7 }
  0x76   : > { %2596 = shalt.err (!%p2593_p0)
}
  0x77   : > { %s2597_s30 = scalar_lea.vmem %s2983_s23, 512  ;;  %s2761_s27 = smov [#allocation4]  }
  0x78   : > { %p2598_p3 = scmp.ne.s32.totalorder %s2983_s23, %s2597_s30  ;;  %s2602_s25 = sshll.u32 %s2761_s27, 4  ;;  %s2603_s25 = int_to_ptr.vmem [resolvable:$false] %s2602_s25 }
  0x79   : > { %s2604_s16 = scalar_lea.vmem %s2603_s25, 1024  ;;  %p2605_p9 = scmp.lt.s32.totalorder %s2983_s23, %s2603_s25 }
  0x7a   : > { %p2600_p6 = pnand %p2598_p3, %p2584_p5  ;;  %p2606_p4 = scmp.lt.s32.totalorder %s2604_s16, %s2597_s30 }
  0x7c   : > { %p2601_p10 = pneg %p2600_p6  ;;  %p2607_p11 = por %p2606_p4, %p2605_p9 }
  0x7e   : > { %p2608_p1 = pnand %p2607_p11, %p2601_p10 }
  0x80   : > { %2611 = shalt.err (!%p2608_p1)
}
  0x81   : > { %s3452_s17 = smov 8   ;;  %s3453_s0 = smov 128  }
  0x82   : > { %2396 = dma.hbm_to_vmem [thread:$0]  (!%p2985_p2), %s2981_s11, 512, %s2983_s23, %s2996_s7, %s3453_s0, %s3453_s0, %s3452_s17  }
  0x83   : > { %s410_s21 = sand.u32 1, %s2754_s28   ;;  %s2612_s20 = scalar_lea.hbm %s2992_s19, 512 }
  0x84   : > { %s3031_s22 = scalar_lea.sflag [#allocation8], %s410_s21  ;;  %p2613_p9 = scmp.ne.s32.totalorder %s2992_s19, %s2612_s20 }
  0x85   : > { %s2617_s25 = scalar_lea.hbm %s3413_s3, 1024  ;;  %p2618_p8 = scmp.lt.u32.totalorder %s2992_s19, %s3413_s3 }
  0x86   : > { %p2615_p10 = pnand %p2613_p9, %p2584_p5  ;;  %p2619_p12 = scmp.lt.u32.totalorder %s2617_s25, %s2612_s20 }
  0x87   : > { %p2621_p3 = scmp.lt.u32.totalorder %s2612_s20, %s2992_s19 }
  0x88   : > { %p2616_p7 = pneg %p2615_p10  ;;  %p2620_p0 = por %p2619_p12, %p2618_p8 }
  0x8a   : > { %p2622_p6 = por %p2621_p3, %p2620_p0 }
  0x8c   : > { %p2623_p4 = pnand %p2622_p6, %p2616_p7 }
  0x8e   : > { %2626 = shalt.err (!%p2623_p4)
}
  0x8f   : > { %s2627_s7 = scalar_lea.vmem %s3028_s6, 512  ;;  %s2762_s11 = smov [#allocation7]  }
  0x90   : > { %p2628_p11 = scmp.ne.s32.totalorder %s3028_s6, %s2627_s7  ;;  %s2632_s23 = sshll.u32 %s2762_s11, 4  ;;  %s2633_s23 = int_to_ptr.vmem [resolvable:$false] %s2632_s23 }
  0x91   : > { %s2634_s2 = scalar_lea.vmem %s2633_s23, 1024  ;;  %p2635_p10 = scmp.lt.s32.totalorder %s3028_s6, %s2633_s23 }
  0x92   : > { %p2630_p1 = pnand %p2628_p11, %p2584_p5  ;;  %p2636_p8 = scmp.lt.s32.totalorder %s2634_s2, %s2627_s7 }
  0x94   : > { %p2631_p9 = pneg %p2630_p1  ;;  %p2637_p12 = por %p2636_p8, %p2635_p10 }
  0x96   : > { %p2638_p0 = pnand %p2637_p12, %p2631_p9 }
  0x98   : > { %2641 = shalt.err (!%p2638_p0)
}
  0x99   : > { %2399 = dma.hbm_to_vmem [thread:$0]  (!%p2985_p2), %s2992_s19, 512, %s3028_s6, %s3031_s22, %s3453_s0, %s3453_s0, %s3452_s17  }
  0x9a   : > { %434 = sbr.rel (%p2882_p13) target bundleno = 2058 (0x80a), region = 60  ;;  %s3063_s21 = sand.u32 (!%p2882_p13), 1, %s2746_s26  }
  0x9b   : > { %s3066_s20 = sshll.u32 (!%p2882_p13), %s3063_s21, 5  ;;  %s437_s18 = scalar_lea.sflag (!%p2882_p13), [#allocation5], %s3063_s21 }
  0x9c   : > { %s3070_s30 = scalar_lea.vmem (!%p2882_p13), [#allocation4], %s3066_s20  ;;  %p3454_p5 = scmp.ne.s32.totalorder (!%p2882_p13), %s3440_s13, 0 }
  0xa1   : > { %2717 = dma.done.wait (%p3454_p5), %s437_s18, 512  }
  0xa2   : > { %2719 = vsyncadd (%p3454_p5), %s437_s18, 4294966784  ;;  %s445_s6 = sand.u32 1, %s2863_s29   ;;  %s3078_s19 = scalar_lea.vmem [#allocation7], %s3066_s20 }
  0xa3   : > { %s446_s15 = scalar_lea.sflag [#allocation8], %s445_s6 }
  0xa4   : > { %2721 = dma.done.wait (%p3454_p5), %s446_s15, 512  }
  0xa5   : > { %2723 = vsyncadd (%p3454_p5), %s446_s15, 4294966784  ;;  %p3455_p13 = scmp.eq.s32.totalorder %s2863_s29, 0 }
  0xa7   : > { %2725 = dma.done.wait (%p3455_p13), [#allocation8], 1024   ;;  %p3456_p2 = pmov %p3455_p13 }
  0xa9   : > { %2727 = vsyncadd (%p3456_p2), [#allocation8], 4294966272  ;;  %p3457_p7 = pmov %p3456_p2 }
  0xaa   : > { %p3458_p3 = pmov %p3456_p2 }
  0xab   : > { %2729 = dma.done.wait (%p3457_p7), [#allocation11], 1024  }
  0xac   : > { %2731 = vsyncadd (%p3458_p3), [#allocation11], 4294966272  ;;  %s3093_s17 = sshll.u32 %s2863_s29, 1  ;;  %v2763_v0 = vmov 0.0|0.0   ;;  %vm2764_vm0 = vmmov 0   ;;  %v2765_v1 = vmov 0.0   ;;  %v841_v48 = vlaneseq }
  0xad   : > { %p513_p6 = scmp.lt.s32.totalorder %s3093_s17, 3  ;;  %2294 = vmatprep.subr.bf16.mxu1 %v2763_v0  ;;  %2181 = vmatprep.mubr.msk.f32.mxu1 %vm2764_vm0, %v2765_v1  ;;  %v536_v2 = vld [vmem:[%s3414_s4] sm:$0xff]  ;;  %v537_v3 = vld [vmem:[%s3414_s4 + $0x8] sm:$0xff]  ;;  %v538_v4 = vld [vmem:[%s3414_s4 + $0x10] sm:$0xff]  ;;  %vm544_vm1 = vcmask 523264   ;;  %v2766_v26 = vmov 1  }
  0xae   : > { %v2278_v5 = vpack.c.bf16 %v537_v3, %v536_v2  ;;  %v539_v6 = vld [vmem:[%s3414_s4 + $0x18] sm:$0xff]  ;;  %v540_v8 = vld [vmem:[%s3414_s4 + $0x20] sm:$0xff]  ;;  %v541_v9 = vld [vmem:[%s3414_s4 + $0x28] sm:$0xff]  ;;  %2460 = vset.pattern.permute.xlu1 %v2766_v26  ;;  %v2767_v27 = vmov 0   ;;  %v857_v49 = vshrl.u32 %v841_v48, 7  ;;  %v3174_v55 = vand.u32 127, %v841_v48 }
  0xaf   : > { %s514_s13 = scalar_select %p513_p6, %s3093_s17, 3  ;;  %v2282_v7 = vpack.c.bf16 %v539_v6, %v538_v4  ;;  %v528_v11 = vld [vmem:[%s3070_s30] sm:$0xff]  ;;  %v529_v12 = vld [vmem:[%s3070_s30 + $0x8] sm:$0xff]  ;;  %vm3129_vm2 = vmpackc.low %vm544_vm1, %vm544_vm1  ;;  %v2286_v15 = vpack.c.bf16 %v541_v9, %v540_v8  ;;  %2459 = vset.pattern.permute.xlu0 %v2767_v27  ;;  %vm864_vm4 = vcmask 130048   ;;  %vm1104_vm6 = vcmask 261120  }
  0xb0   : > { %2279 = vmatprep.subr.bf16.mxu0 %v2278_v5  ;;  %v2295_v14 = vpack.c.bf16 %v529_v12, %v528_v11  ;;  %v542_v16 = vld [vmem:[%s3414_s4 + $0x30] sm:$0xff]  ;;  %v543_v17 = vld [vmem:[%s3414_s4 + $0x38] sm:$0xff]  ;;  %v642_v24 = vld [vmem:[%s3415_s5] sm:$0x3]  ;;  %v858_v50 = vsub.s32 0, %v857_v49  ;;  %v982_v51 = vsub.s32 1, %v857_v49 }
  0xb1   : > { %s2077_s0 = sshll.u32 %s514_s13, 4  ;;  %2281 = vmatpush3.bf16.msra.mxu0 %v2278_v5  ;;  %v530_v18 = vld [vmem:[%s3070_s30 + $0x10] sm:$0xff]  ;;  %v531_v19 = vld [vmem:[%s3070_s30 + $0x18] sm:$0xff]  ;;  %v2290_v20 = vpack.c.bf16 %v543_v17, %v542_v16  ;;  %v728_v28 = vld [vmem:[#allocation9] sm:$0xff]  ;;  %s843_s30 = sld [smem:[#allocation3 + %s3093_s17]] }
  0xb2   : > { %s3100_s25 = scalar_lea.vmem %s3411_s1, %s2077_s0  ;;  %2283 = vmatprep.subr.bf16.mxu0 %v2282_v7  ;;  %2297 = vmatpush3.bf16.xpose.msk.msra.mxu1 %vm3129_vm2, %v2295_v14  ;;  %v2299_v21 = vpack.c.bf16 %v531_v19, %v530_v18  ;;  %v729_v29 = vld [vmem:[#allocation9 + $0x8] sm:$0xff]  ;;  %v730_v30 = vld [vmem:[#allocation9 + $0x10] sm:$0xff]  ;;  %v731_v32 = vld [vmem:[#allocation9 + $0x18] sm:$0xff]  ;;  %s2769_s6 = smov 112  }
  0xb3   : > { %v3121_v10 = vld [vmem:[%s3100_s25] sm:$0xff]  ;;  %2298 = vmatprep.subr.bf16.mxu1 %v2763_v0  ;;  %v3146_v22 = vld [vmem:[%s3100_s25 + $0x8] sm:$0xff]  ;;  %v3149_v23 = vld [vmem:[%s3100_s25 + $0x10] sm:$0xff]  ;;  %v2302_v31 = vpack.c.bf16 %v729_v29, %v728_v28  ;;  %v2306_v33 = vpack.c.bf16 %v731_v32, %v730_v30  ;;  %s1267_s15 = sadd.s32 1, %s3093_s17  ;;  %s2020_s0 = sshll.u32 %s3063_s21, 6 }
  0xb4   : > { %2167 = vmatprep.mubr.msk.f32.mxu0 %vm544_vm1, %v3121_v10  ;;  %v3159_v25 = vld [vmem:[%s3100_s25 + $0x18] sm:$0xff]  ;;  %v732_v34 = vld [vmem:[#allocation9 + $0x20] sm:$0xff]  ;;  %v733_v35 = vld [vmem:[#allocation9 + $0x28] sm:$0xff]  ;;  %s2768_s25 = smov 96   ;;  %s1268_s13 = sld [smem:[#allocation3 + %s1267_s15]] }
  0xb5   : > { %2285 = vmatpush3.bf16.msra.mxu0 %v2282_v7  ;;  %v532_v36 = vld [vmem:[%s3078_s19] sm:$0xff]  ;;  %v2310_v37 = vpack.c.bf16 %v733_v35, %v732_v34  ;;  %v734_v38 = vld [vmem:[#allocation9 + $0x30] sm:$0xff]  ;;  %v735_v39 = vld [vmem:[#allocation9 + $0x38] sm:$0xff]  ;;  %s3308_s23 = scalar_lea.vmem [#allocation12], %s3066_s20  ;;  %s2081_s2 = sshll.u32 %s2863_s29, 10 }
  0xb6   : > { %2287 = vmatprep.subr.bf16.mxu0 %v2286_v15  ;;  %v2314_v40 = vpack.c.bf16 %v735_v39, %v734_v38  ;;  %v533_v41 = vld [vmem:[%s3078_s19 + $0x8] sm:$0xff]  ;;  %s1811_s20 = scalar_lea.sflag [#allocation14], %s3063_s21  ;;  %p3463_p11 = scmp.ne.s32.totalorder %s3448_s24, 0 }
  0xb7   : > { %v844_v57 = vstv %s843_s30 }
  0xb8   : > { %vm845_vm3 = vcmp.ge.s32.totalorder %v3174_v55, %v844_v57 }
  0xb9   : > { %2289 = vmatpush3.bf16.msra.mxu0 %v2286_v15 }
  0xba   : > { %2291 = vmatprep.subr.bf16.mxu0 %v2290_v20  ;;  %2301 = vmatpush3.bf16.xpose.msk.msra.mxu1 %vm3129_vm2, %v2299_v21 }
  0xbd   : > { %2293 = vmatpush3.bf16.msra.mxu0 %v2290_v20 }
  0xbe   : > { %2303 = vmatprep.subr.bf16.mxu0 %v2302_v31 }
  0xc0   : > { %2168 = vmatmul.mubr.msk.f32.vlgmr.msra.gmra.mrb[0].mxu0 %vm544_vm1, %v3146_v22 }
  0xc1   : > { %2170 = vmatprep.mubr.msk.f32.mxu0 %vm544_vm1, %v3149_v23  ;;  %2182 = vmatmul.mubr.msk.f32.vlgmr.msra.gmra.mrb[0].mxu1 %vm544_vm1, %v642_v24 }
  0xc2   : > { %2305 = vmatpush3.bf16.msra.mxu0 %v2302_v31 }
  0xc3   : > { %2307 = vmatprep.subr.bf16.mxu0 %v2306_v33 }
  0xc4   : > { %2171 = vmatmul.mubr.msk.f32.gmra.mrb[2].mxu0 %vm544_vm1, %v3159_v25 }
  0xc5   : > { %2200 = vmatprep.mubr.msk.f32.mxu0 %vm544_vm1, %v532_v36 }
  0xc6   : > { %2309 = vmatpush3.bf16.msra.mxu0 %v2306_v33 }
  0xc7   : > { %2311 = vmatprep.subr.bf16.mxu0 %v2310_v37 }
  0xca   : > { %2313 = vmatpush3.bf16.msra.mxu0 %v2310_v37 }
  0xcb   : > { %2315 = vmatprep.subr.bf16.mxu0 %v2314_v40 }
  0xce   : > { %2317 = vmatpush3.bf16.msra.mxu0 %v2314_v40 }
  0xd1   : > { %2201 = vmatmul.mubr.msk.f32.vlgmr.msra.gmra.mrb[4].mxu0 %vm544_vm1, %v533_v41 }
 0x193   : > { %v2169_v42 = vpop.f32.mrb[0].mxu0 }
 0x194   : > { %v623_v43 = vpop.f32.mrb[1].mxu0  ;;  %v724_v44 = vpop.f32.mrb[0].mxu1 }
 0x195   : > { %973 = vperm.xlu1 %2460, %v623_v43   ;;  %848 = vperm.xlu0 %2459, %v623_v43   ;;  %v2183_v45 = vpop.f32.mrb[1].mxu1  ;;  %v3172_v54 = vrot.slane %v724_v44, %v858_v50  ;;  %v3176_v56 = vrot.slane %v724_v44, %v982_v51  ;;  %v535_v43 = vld [vmem:[%s3078_s19 + $0x18] sm:$0xff] }
 0x197   : > { %v3169_v46 = vpop.f32.mrb[2].mxu0 }
 0x198   : > { %v633_v47 = vpop.f32.mrb[3].mxu0 }
 0x199   : > { %977 = vperm.xlu1 %2460, %v2169_v42   ;;  %853 = vperm.xlu0 %2459, %v2169_v42   ;;  %v534_v42 = vld [vmem:[%s3078_s19 + $0x10] sm:$0xff]  ;;  %s3209_s19 = scalar_lea.vmem [#allocation13], %s2020_s0 }
 0x19a   : > { %2203 = vmatprep.mubr.msk.f32.mxu0 %vm544_vm1, %v534_v42  ;;  %s1842_s18 = sshll.u32 %s3209_s19, 4  ;;  %s3321_s18 = int_to_ptr.vmem [resolvable:$true] %s1842_s18 }
 0x19b   : > { %2204 = vmatmul.mubr.msk.f32.gmra.mrb[6].mxu0 %vm544_vm1, %v535_v43  ;;  %s2642_s15 = scalar_lea.vmem %s3321_s18, 1024 }
 0x19c   : > { %p2643_p4 = scmp.ne.s32.totalorder %s3321_s18, %s2642_s15 }
 0x19d   : > { %2461 = vset.pattern.permute.xlu1 %v2767_v27 }
 0x19e   : > { %p2644_p1 = pnand %p2643_p4, %p3463_p11 }
 0x1a0   : > { %p2645_p9 = pneg %p2644_p1 }
 0x1a4   : > { %v2202_v8 = vpop.f32.mrb[4].mxu0 }
 0x1a5   : > { %v814_v9 = vpop.f32.mrb[5].mxu0 }
 0x1a6   : > { %v2463_v11 = vpack.i.bf16 %v2202_v8, %v814_v9  ;;  %v2318_v12 = vpack.c.bf16 %v2202_v8, %v814_v9  ;;  %v833_v9 = vld [vmem:[#allocation10] sm:$0xff] }
 0x1a8   : > { %2319 = vmatprep.subr.bf16.mxu1 %v2318_v12 }
 0x1a9   : > { %2321 = vmatpush3.bf16.msra.mxu1 %v2318_v12  ;;  %v837_v12 = vld [vmem:[#allocation10 + $0x20] sm:$0xff] }
 0x214   : > { %v974_v52 = vpop.permute.xlu1 %973  ;;  %v849_v53 = vpop.permute.xlu0 %848 }
 0x215   : > { %v860_v60 = vadd.f32 %v3172_v54, %v849_v53  ;;  %v984_v3 = vadd.f32 %v3176_v56, %v974_v52 }
 0x217   : > { %v862_v4 = vsel %vm845_vm3, -1e+10, %v860_v60  ;;  %v986_v6 = vsel %vm845_vm3, -1e+10, %v984_v3 }
 0x218   : > { %v978_v58 = vpop.permute.xlu1 %977  ;;  %v854_v59 = vpop.permute.xlu0 %853  ;;  %v865_v5 = vsel %vm864_vm4, %v862_v4, -inf  ;;  %v988_v7 = vsel %vm864_vm4, %v986_v6, -inf }
 0x219   : > { %v985_v61 = vadd.f32 %v3176_v56, %v978_v58  ;;  %v861_v62 = vadd.f32 %v3172_v54, %v854_v59  ;;  %v1269_v58 = vstv %s1268_s13  ;;  %s2770_s13 = smov [#allocation13]  }
 0x21a   : > { %vm3215_vm5 = vcmp.ge.s32.totalorder %v3174_v55, %v1269_v58  ;;  %s2646_s0 = sshll.u32 %s2770_s13, 4  ;;  %s2647_s0 = int_to_ptr.vmem [resolvable:$false] %s2646_s0 }
 0x21b   : > { %v987_v63 = vsel %vm845_vm3, -1e+10, %v985_v61  ;;  %v863_v0 = vsel %vm845_vm3, -1e+10, %v861_v62  ;;  %p2649_p10 = scmp.lt.s32.totalorder %s3321_s18, %s2647_s0 }
 0x21c   : > { %v991_v1 = vsel %vm864_vm4, %v987_v63, -inf  ;;  %v868_v2 = vsel %vm864_vm4, %v863_v0, -inf }
 0x21d   : > { %992 = vmax.xlane.f32.xlu0 %v991_v1  ;;  %869 = vmax.xlane.f32.xlu1 %v868_v2 }
 0x221   : > { %866 = vmax.xlane.f32.xlu0 %v865_v5 }
 0x225   : > { %989 = vmax.xlane.f32.xlu0 %v988_v7 }
 0x22e   : > { %1273 = vperm.xlu1 %2461, %v633_v47  }
 0x232   : > { %2462 = vset.pattern.permute.xlu1 %v2766_v26 }
 0x233   : > { %1402 = vperm.xlu1 %2462, %v633_v47  }
 0x23b   : > { %1278 = vperm.xlu0 %2459, %v3169_v46  }
 0x23f   : > { %2473 = vset.pattern.permute.xlu0 %v2766_v26 }
 0x2aa   : > { %v870_v13 = vpop.xlane.xlu1 %869  ;;  %v993_v14 = vpop.xlane.xlu0 %992 }
 0x2ab   : > { %v872_v15 = vsub.f32 %v863_v0, %v870_v13  ;;  %v995_v16 = vsub.f32 %v987_v63, %v993_v14  ;;  %v838_v14 = vld [vmem:[#allocation10 + $0x28] sm:$0xff] }
 0x2ad   : > { %v875_v17 = vmul.f32 1.442695, %v872_v15  ;;  %v998_v18 = vmul.f32 1.442695, %v995_v16  ;;  %v835_v15 = vld [vmem:[#allocation10 + $0x10] sm:$0xff]  ;;  %v836_v16 = vld [vmem:[#allocation10 + $0x18] sm:$0xff] }
 0x2ae   : > { %v867_v19 = vpop.xlane.xlu0 %866  ;;  %v1274_v36 = vpop.permute.xlu1 %1273 }
 0x2af   : > { %2474 = vpow2.f32 %v875_v17  ;;  %v871_v20 = vsub.f32 %v862_v4, %v867_v19  ;;  %v1281_v38 = vadd.f32 %v1274_v36, %v3172_v54  ;;  %v2326_v17 = vpack.c.bf16 %v838_v14, %v837_v12  ;;  %v839_v19 = vld [vmem:[#allocation10 + $0x30] sm:$0xff]  ;;  %v2060_v12 = vld [vmem:[%s3418_s8] ss:$0 sm:$0xff] }
 0x2b0   : > { %2476 = vpow2.f32 %v998_v18  ;;  %v3240_v18 = vpack.c.bf16 %v836_v16, %v835_v15 }
 0x2b1   : > { %v873_v21 = vmul.f32 1.442695, %v871_v20  ;;  %2327 = vmatprep.subr.bf16.mxu0 %v2326_v17  ;;  %v840_v20 = vld [vmem:[#allocation10 + $0x38] sm:$0xff] }
 0x2b2   : > { %v990_v24 = vpop.xlane.xlu0 %989  ;;  %v1403_v39 = vpop.permute.xlu1 %1402  ;;  %2329 = vmatpush3.bf16.msra.mxu0 %v2326_v17 }
 0x2b3   : > { %2478 = vpow2.f32 %v873_v21  ;;  %v994_v26 = vsub.f32 %v986_v6, %v990_v24  ;;  %v1409_v41 = vadd.f32 %v1403_v39, %v3176_v56  ;;  %v2330_v21 = vpack.c.bf16 %v840_v20, %v839_v19 }
 0x2b5   : > { %v996_v27 = vmul.f32 1.442695, %v994_v26  ;;  %2331 = vmatprep.subr.bf16.mxu0 %v2330_v21 }
 0x2b6   : > { %2333 = vmatpush3.bf16.msra.mxu0 %v2330_v21 }
 0x2b7   : > { %2480 = vpow2.f32 %v996_v27 }
 0x2b9   : > { %v2475_v28 = vpop.eup %2474 }
 0x2ba   : > { %v880_v29 = vsel %vm864_vm4, %v2475_v28, 0.0  ;;  %v2477_v30 = vpop.eup %2476  ;;  %v1279_v37 = vpop.permute.xlu0 %1278 }
 0x2bb   : > { %881 = vadd.xlane.f32.xlu0 %v880_v29  ;;  %v1003_v32 = vsel %vm864_vm4, %v2477_v30, 0.0  ;;  %v1282_v40 = vadd.f32 %v1279_v37, %v3172_v54 }
 0x2bd   : > { %v2479_v31 = vpop.eup %2478 }
 0x2be   : > { %v877_v33 = vsel %vm864_vm4, %v2479_v31, 0.0 }
 0x2bf   : > { %1004 = vadd.xlane.f32.xlu0 %v1003_v32  ;;  %878 = vadd.xlane.f32.xlu1 %v877_v33 }
 0x2c1   : > { %v2481_v34 = vpop.eup %2480 }
 0x2c2   : > { %v1000_v35 = vsel %vm864_vm4, %v2481_v34, 0.0 }
 0x2c3   : > { %1001 = vadd.xlane.f32.xlu1 %v1000_v35 }
 0x2d4   : > { %1406 = vperm.xlu1 %2462, %v3169_v46  }
 0x2d5   : > { %2464 = vrot.lane.b32.xlu0 %v2463_v11, %s2768_s25  ;;  %v834_v11 = vld [vmem:[#allocation10 + $0x8] sm:$0xff] }
 0x2d6   : > { %v3238_v13 = vpack.c.bf16 %v834_v11, %v833_v9 }
 0x2d8   : > { %1285 = vrot.lane.b32.xlu1 %v1281_v38, %s2769_s6 }
 0x2d9   : > { %1287 = vrot.lane.b32.xlu0 %v1282_v40, %s2769_s6 }
 0x2dc   : > { %1413 = vrot.lane.b32.xlu1 %v1409_v41, %s2769_s6 }
 0x348   : > { %v882_v44 = vpop.xlane.xlu0 %881 }
 0x349   : > { %2482 = vrcp.f32 %v882_v44 }
 0x34c   : > { %v1005_v45 = vpop.xlane.xlu0 %1004  ;;  %v879_v46 = vpop.xlane.xlu1 %878 }
 0x34d   : > { %2484 = vrcp.f32 %v1005_v45 }
 0x34e   : > { %2486 = vrcp.f32 %v879_v46 }
 0x350   : > { %v1002_v47 = vpop.xlane.xlu1 %1001  ;;  %v2465_v48 = vpop.permute.xlu0 %2464 }
 0x351   : > { %2488 = vrcp.f32 %v1002_v47  ;;  %v2467_v49 = vunpack.i.h.bf16 %v2465_v48  ;;  %v2466_v50 = vunpack.i.l.bf16 %v2465_v48 }
 0x353   : > { %v2483_v51 = vpop.eup %2482  ;;  %v2322_v52 = vpack.c.bf16 %v2467_v49, %v2466_v50 }
 0x354   : > { %v888_v53 = vmul.f32 %v2483_v51, %v2475_v28  ;;  %v1407_v54 = vpop.permute.xlu1 %1406  ;;  %v1288_v3 = vpop.permute.xlu0 %1287 }
 0x355   : > { %v1410_v57 = vadd.f32 %v1407_v54, %v3176_v56  ;;  %2323 = vmatprep.subr.bf16.mxu1 %v2322_v52  ;;  %v1292_v4 = vsel %vm3215_vm5, -1e+10, %v1288_v3 }
 0x356   : > { %890 = vst.msk [vmem:[%s3209_s19 + $0x8] sm:$0xff] %vm864_vm4, %v888_v53  ;;  %v1296_v6 = vsel %vm864_vm4, %v1292_v4, -inf }
 0x357   : > { %v2485_v59 = vpop.eup %2484  ;;  %1415 = vrot.lane.b32.xlu0 %v1410_v57, %s2769_s6  ;;  %s3319_s6 = scalar_lea.hbm %s3422_s12, %s2081_s2 }
 0x358   : > { %v2487_v60 = vpop.eup %2486  ;;  %v1011_v61 = vmul.f32 %v2485_v59, %v2477_v30  ;;  %v1286_v56 = vpop.permute.xlu1 %1285 }
 0x359   : > { %v1291_v63 = vsel %vm3215_vm5, -1e+10, %v1286_v56  ;;  %v887_v0 = vmul.f32 %v2487_v60, %v2479_v31  ;;  %v2205_v30 = vpop.f32.mrb[6].mxu0 }
 0x35a   : > { %2041 = vst.msk [vmem:[%s3209_s19 + $0x18] sm:$0xff] %vm864_vm4, %v1011_v61  ;;  %v1293_v1 = vsel %vm864_vm4, %v1291_v63, -inf  ;;  %v824_v32 = vpop.f32.mrb[7].mxu0 }
 0x35b   : > { %v2489_v2 = vpop.eup %2488  ;;  %889 = vst.msk [vmem:[%s3209_s19] sm:$0xff] %vm864_vm4, %v887_v0  ;;  %2210 = vmatprep.mubr.msk.f32.mxu1 %vm864_vm4, %v887_v0  ;;  %1294 = vmax.xlane.f32.xlu1 %v1293_v1  ;;  %v2468_v33 = vpack.i.bf16 %v2205_v30, %v824_v32 }
 0x35c   : > { %2211 = vmatmul.mubr.msk.f32.vlgmr.msra.gmra.mrb[2].mxu1 %vm864_vm4, %v888_v53  ;;  %v1010_v55 = vmul.f32 %v2489_v2, %v2481_v34  ;;  %v1414_v5 = vpop.permute.xlu1 %1413  ;;  %v2342_v34 = vpack.c.bf16 %v2205_v30, %v824_v32 }
 0x35d   : > { %2325 = vmatpush3.bf16.msra.mxu1 %v2322_v52  ;;  %v1419_v7 = vsel %vm3215_vm5, -1e+10, %v1414_v5 }
 0x35e   : > { %2040 = vst.msk [vmem:[%s3209_s19 + $0x10] sm:$0xff] %vm864_vm4, %v1010_v55  ;;  %2217 = vmatprep.mubr.msk.f32.mxu1 %vm864_vm4, %v1010_v55  ;;  %v1421_v8 = vsel %vm864_vm4, %v1419_v7, -inf  ;;  %2335 = vmatprep.subr.bf16.mxu1 %v3238_v13 }
 0x35f   : > { %2343 = vmatprep.subr.bf16.mxu0 %v2342_v34 }
 0x360   : > { %2218 = vmatmul.mubr.msk.f32.vlgmr.msra.gmra.mrb[4].mxu1 %vm864_vm4, %v1011_v61 }
 0x361   : > { %2337 = vmatpush3.bf16.msra.mxu1 %v3238_v13 }
 0x362   : > { %2339 = vmatprep.subr.bf16.mxu1 %v3240_v18 }
 0x365   : > { %2341 = vmatpush3.bf16.msra.mxu1 %v3240_v18 }
 0x366   : > { %2351 = vmatprep.subr.bf16.mxu1 %v2326_v17 }
 0x376   : > { %1297 = vmax.xlane.f32.xlu0 %v1296_v6 }
 0x37a   : > { %1422 = vmax.xlane.f32.xlu0 %v1421_v8 }
 0x3c9   : > { %v1416_v24 = vpop.permute.xlu0 %1415 }
 0x3ca   : > { %v1420_v26 = vsel %vm3215_vm5, -1e+10, %v1416_v24 }
 0x3cb   : > { %v1424_v27 = vsel %vm864_vm4, %v1420_v26, -inf }
 0x3cc   : > { %1425 = vmax.xlane.f32.xlu1 %v1424_v27 }
 0x3e8   : > { %v1295_v28 = vpop.xlane.xlu1 %1294 }
 0x3e9   : > { %v1299_v29 = vsub.f32 %v1291_v63, %v1295_v28 }
 0x3eb   : > { %v1301_v31 = vmul.f32 1.442695, %v1299_v29 }
 0x3ed   : > { %2490 = vpow2.f32 %v1301_v31 }
 0x3f7   : > { %v2491_v35 = vpop.eup %2490 }
 0x3f8   : > { %v1305_v36 = vsel %vm864_vm4, %v2491_v35, 0.0 }
 0x3f9   : > { %1306 = vadd.xlane.f32.xlu0 %v1305_v36 }
 0x403   : > { %v1298_v37 = vpop.xlane.xlu0 %1297 }
 0x404   : > { %v1300_v38 = vsub.f32 %v1292_v4, %v1298_v37 }
 0x406   : > { %v1303_v39 = vmul.f32 1.442695, %v1300_v38 }
 0x407   : > { %v1423_v40 = vpop.xlane.xlu0 %1422 }
 0x408   : > { %2492 = vpow2.f32 %v1303_v39  ;;  %v1427_v41 = vsub.f32 %v1419_v7, %v1423_v40 }
 0x40a   : > { %v1429_v42 = vmul.f32 1.442695, %v1427_v41 }
 0x40c   : > { %2494 = vpow2.f32 %v1429_v42 }
 0x412   : > { %v2493_v43 = vpop.eup %2492 }
 0x413   : > { %v1308_v44 = vsel %vm864_vm4, %v2493_v43, 0.0 }
 0x414   : > { %1309 = vadd.xlane.f32.xlu1 %v1308_v44 }
 0x416   : > { %v2495_v45 = vpop.eup %2494 }
 0x417   : > { %v1433_v46 = vsel %vm864_vm4, %v2495_v45, 0.0 }
 0x418   : > { %1434 = vadd.xlane.f32.xlu0 %v1433_v46 }
 0x42e   : > { %2469 = vrot.lane.b32.xlu0 %v2468_v33, %s2768_s25 }
 0x42f   : > { %v2212_v47 = vpop.f32.mrb[2].mxu1 }
 0x430   : > { %v963_v48 = vpop.f32.mrb[3].mxu1 }
 0x431   : > { %2239 = vmatprep.mubr.msk.f32.mxu1 %vm1104_vm6, %v963_v48 }
 0x432   : > { %2240 = vmatmul.mubr.msk.f32.vlgmr.msra.gmra.mrb[6].mxu1 %vm1104_vm6, %v2212_v47 }
 0x433   : > { %v2219_v49 = vpop.f32.mrb[4].mxu1  ;;  %2353 = vmatpush3.bf16.msra.mxu1 %v2326_v17 }
 0x434   : > { %v1095_v50 = vpop.f32.mrb[5].mxu1  ;;  %2355 = vmatprep.subr.bf16.mxu1 %v2330_v21 }
 0x435   : > { %2228 = vmatprep.mubr.msk.f32.mxu0 %vm1104_vm6, %v1095_v50 }
 0x436   : > { %2229 = vmatmul.mubr.msk.f32.vlgmr.msra.gmra.mrb[8].mxu0 %vm1104_vm6, %v2219_v49 }
 0x437   : > { %2345 = vmatpush3.bf16.msra.mxu0 %v2342_v34  ;;  %2357 = vmatpush3.bf16.msra.mxu1 %v2330_v21 }
 0x438   : > { %2359 = vmatprep.subr.bf16.mxu1 %v3238_v13 }
 0x459   : > { %v1426_v51 = vpop.xlane.xlu1 %1425 }
 0x45a   : > { %v1428_v52 = vsub.f32 %v1420_v26, %v1426_v51 }
 0x45c   : > { %v1431_v53 = vmul.f32 1.442695, %v1428_v52 }
 0x45e   : > { %2496 = vpow2.f32 %v1431_v53 }
 0x468   : > { %v2497_v54 = vpop.eup %2496 }
 0x469   : > { %v1436_v57 = vsel %vm864_vm4, %v2497_v54, 0.0 }
 0x46a   : > { %1437 = vadd.xlane.f32.xlu1 %v1436_v57 }
 0x486   : > { %v1307_v58 = vpop.xlane.xlu0 %1306 }
 0x487   : > { %2498 = vrcp.f32 %v1307_v58 }
 0x491   : > { %v2499_v59 = vpop.eup %2498 }
 0x492   : > { %v1315_v60 = vmul.f32 %v2499_v59, %v2491_v35 }
 0x494   : > { %2048 = vst.msk [vmem:[%s3209_s19 + $0x20] sm:$0xff] %vm864_vm4, %v1315_v60  ;;  %2246 = vmatprep.mubr.msk.f32.mxu0 %vm864_vm4, %v1315_v60 }
 0x4a1   : > { %v1310_v61 = vpop.xlane.xlu1 %1309 }
 0x4a2   : > { %2500 = vrcp.f32 %v1310_v61 }
 0x4a5   : > { %v1435_v62 = vpop.xlane.xlu0 %1434 }
 0x4a6   : > { %2502 = vrcp.f32 %v1435_v62 }
 0x4a9   : > { %v2470_v56 = vpop.permute.xlu0 %2469 }
 0x4aa   : > { %v2472_v63 = vunpack.i.h.bf16 %v2470_v56  ;;  %v2471_v0 = vunpack.i.l.bf16 %v2470_v56 }
 0x4ac   : > { %v2501_v1 = vpop.eup %2500  ;;  %v2346_v2 = vpack.c.bf16 %v2472_v63, %v2471_v0 }
 0x4ad   : > { %v1316_v55 = vmul.f32 %v2501_v1, %v2493_v43 }
 0x4ae   : > { %2347 = vmatprep.subr.bf16.mxu0 %v2346_v2 }
 0x4af   : > { %2049 = vst.msk [vmem:[%s3209_s19 + $0x28] sm:$0xff] %vm864_vm4, %v1316_v55  ;;  %2247 = vmatmul.mubr.msk.f32.vlgmr.msra.gmra.mrb[10].mxu0 %vm864_vm4, %v1316_v55 }
 0x4b0   : > { %v2503_v3 = vpop.eup %2502  ;;  %2349 = vmatpush3.bf16.msra.mxu0 %v2346_v2 }
 0x4b1   : > { %v1443_v4 = vmul.f32 %v2503_v3, %v2495_v45 }
 0x4b3   : > { %2052 = vst.msk [vmem:[%s3209_s19 + $0x30] sm:$0xff] %vm864_vm4, %v1443_v4  ;;  %2253 = vmatprep.mubr.msk.f32.mxu0 %vm864_vm4, %v1443_v4  ;;  %v2061_v4 = vld [vmem:[%s3419_s9] ss:$0 sm:$0xff] }
 0x4f7   : > { %v1438_v5 = vpop.xlane.xlu1 %1437 }
 0x4f8   : > { %2504 = vrcp.f32 %v1438_v5 }
 0x502   : > { %v2505_v6 = vpop.eup %2504 }
 0x503   : > { %v1444_v7 = vmul.f32 %v2505_v6, %v2497_v54  ;;  %v2062_v6 = vld [vmem:[%s3420_s10] ss:$0 sm:$0xff] }
 0x505   : > { %2053 = vst.msk [vmem:[%s3209_s19 + $0x38] sm:$0xff] %vm864_vm4, %v1444_v7  ;;  %v2241_v8 = vpop.f32.mrb[6].mxu1  ;;  %2254 = vmatmul.mubr.msk.f32.vlgmr.msra.gmra.mrb[12].mxu0 %vm864_vm4, %v1444_v7  ;;  %s2648_s19 = scalar_lea.vmem %s2647_s0, 2048 }
 0x506   : > { %v1258_v9 = vpop.f32.mrb[7].mxu1  ;;  %p2650_p8 = scmp.lt.s32.totalorder %s2648_s19, %s2642_s15 }
 0x508   : > { %p2651_p12 = por %p2650_p8, %p2649_p10 }
 0x509   : > { %v2230_v11 = vpop.f32.mrb[8].mxu0 }
 0x50a   : > { %v1264_v14 = vadd.f32 %v2241_v8, %v2230_v11  ;;  %v1177_v15 = vpop.f32.mrb[9].mxu0  ;;  %p2652_p0 = pnand %p2651_p12, %p2645_p9 }
 0x50b   : > { %v1259_v16 = vadd.f32 %v1258_v9, %v1177_v15 }
 0x50c   : > { %v1707_v17 = vadd.f32 %v2060_v12, %v1264_v14 }
 0x50d   : > { %v1706_v19 = vadd.f32 %v2060_v12, %v1259_v16 }
 0x50e   : > { %v1715_v20 = vmul.f32 0.2, %v1707_v17  ;;  %vm1711_vm7 = vcmp.ge.f32.partialorder %v1707_v17, 0.0 }
 0x50f   : > { %v1714_v21 = vmul.f32 0.2, %v1706_v19  ;;  %vm1710_vm8 = vcmp.ge.f32.partialorder %v1706_v19, 0.0 }
 0x510   : > { %v1719_v24 = vsel %vm1711_vm7, %v1707_v17, %v1715_v20 }
 0x511   : > { %v1723_v26 = vadd.f32 %v1719_v24, %v3146_v22  ;;  %v1718_v27 = vsel %vm1710_vm8, %v1706_v19, %v1714_v21 }
 0x512   : > { %v1722_v29 = vadd.f32 %v1718_v27, %v3121_v10 }
 0x513   : > { %v1729_v28 = vsel %vm544_vm1, %v1723_v26, 0.0 }
 0x514   : > { %1730 = vadd.xlane.f32.xlu1 %v1729_v28  ;;  %v1726_v30 = vsel %vm544_vm1, %v1722_v29, 0.0 }
 0x518   : > { %1727 = vadd.xlane.f32.xlu1 %v1726_v30 }
 0x582   : > { %v2248_v31 = vpop.f32.mrb[10].mxu0 }
 0x583   : > { %v1392_v32 = vpop.f32.mrb[11].mxu0 }
 0x5a1   : > { %v1731_v10 = vpop.xlane.xlu1 %1730 }
 0x5a2   : > { %v1740_v44 = vmul.f32 0.015625, %v1731_v10 }
 0x5a4   : > { %v1744_v47 = vsub.f32 %v1723_v26, %v1740_v44 }
 0x5a5   : > { %v1728_v37 = vpop.xlane.xlu1 %1727 }
 0x5a6   : > { %v1739_v41 = vmul.f32 0.015625, %v1728_v37  ;;  %v1748_v51 = vmul.f32 %v1744_v47, %v1744_v47 }
 0x5a8   : > { %v1743_v45 = vsub.f32 %v1722_v29, %v1739_v41  ;;  %v1754_v52 = vsel %vm544_vm1, %v1748_v51, 0.0 }
 0x5aa   : > { %v1747_v49 = vmul.f32 %v1743_v45, %v1743_v45 }
 0x5ac   : > { %v1751_v50 = vsel %vm544_vm1, %v1747_v49, 0.0 }
 0x5d8   : > { %v2255_v33 = vpop.f32.mrb[12].mxu0 }
 0x5d9   : > { %v1528_v34 = vpop.f32.mrb[13].mxu0 }
 0x5da   : > { %2264 = vmatprep.mubr.msk.f32.mxu1 %vm1104_vm6, %v1528_v34 }
 0x5db   : > { %2265 = vmatmul.mubr.msk.f32.vlgmr.msra.gmra.mrb[8].mxu1 %vm1104_vm6, %v2255_v33 }
 0x5dc   : > { %2361 = vmatpush3.bf16.msra.mxu1 %v3238_v13  ;;  %2275 = vmatprep.mubr.msk.f32.mxu1 %vm1104_vm6, %v1392_v32 }
 0x5dd   : > { %2363 = vmatprep.subr.bf16.mxu1 %v3240_v18 }
 0x5e0   : > { %2365 = vmatpush3.bf16.msra.mxu1 %v3240_v18 }
 0x5e3   : > { %2276 = vmatmul.mubr.msk.f32.vlgmr.msra.gmra.mrb[8].mxu1 %vm1104_vm6, %v2248_v31 }
 0x6b6   : > { %v2277_v22 = vpop.f32.mrb[8].mxu1 }
 0x6b7   : > { %v1709_v35 = vadd.f32 %v2277_v22, %v2060_v12  ;;  %v1690_v36 = vpop.f32.mrb[9].mxu1 }
 0x6b8   : > { %v1708_v38 = vadd.f32 %v2060_v12, %v1690_v36 }
 0x6b9   : > { %vm1713_vm9 = vcmp.ge.f32.partialorder %v1709_v35, 0.0  ;;  %v1717_v39 = vmul.f32 0.2, %v1709_v35 }
 0x6ba   : > { %vm1712_vm10 = vcmp.ge.f32.partialorder %v1708_v38, 0.0  ;;  %v1716_v40 = vmul.f32 0.2, %v1708_v38 }
 0x6bb   : > { %v1721_v42 = vsel %vm1713_vm9, %v1709_v35, %v1717_v39 }
 0x6bc   : > { %v1720_v13 = vsel %vm1712_vm10, %v1708_v38, %v1716_v40  ;;  %v1725_v46 = vadd.f32 %v1721_v42, %v3159_v25 }
 0x6bd   : > { %v1724_v43 = vadd.f32 %v1720_v13, %v3149_v23 }
 0x6be   : > { %v1735_v48 = vsel %vm544_vm1, %v1725_v46, 0.0 }
 0x6bf   : > { %v1732_v18 = vsel %vm544_vm1, %v1724_v43, 0.0 }
 0x6c0   : > { %1733 = vadd.xlane.f32.xlu1 %v1732_v18 }
 0x6c4   : > { %1736 = vadd.xlane.f32.xlu1 %v1735_v48 }
 0x6c8   : > { %1752 = vadd.xlane.f32.xlu1 %v1751_v50 }
 0x6cc   : > { %1755 = vadd.xlane.f32.xlu1 %v1754_v52 }
 0x74d   : > { %v1734_v23 = vpop.xlane.xlu1 %1733 }
 0x74e   : > { %v1741_v53 = vmul.f32 0.015625, %v1734_v23 }
 0x750   : > { %v3291_v54 = vsub.f32 %v1724_v43, %v1741_v53 }
 0x751   : > { %v1737_v57 = vpop.xlane.xlu1 %1736 }
 0x752   : > { %v1742_v58 = vmul.f32 0.015625, %v1737_v57  ;;  %v1749_v25 = vmul.f32 %v3291_v54, %v3291_v54 }
 0x754   : > { %v3295_v59 = vsub.f32 %v1725_v46, %v1742_v58  ;;  %v1757_v60 = vsel %vm544_vm1, %v1749_v25, 0.0 }
 0x755   : > { %1758 = vadd.xlane.f32.xlu0 %v1757_v60  ;;  %v1753_v61 = vpop.xlane.xlu1 %1752 }
 0x756   : > { %v1763_v62 = vmul.f32 0.015625, %v1753_v61  ;;  %v1750_v56 = vmul.f32 %v3295_v59, %v3295_v59 }
 0x758   : > { %v1767_v63 = vadd.f32 1e-05, %v1763_v62  ;;  %v1760_v0 = vsel %vm544_vm1, %v1750_v56, 0.0 }
 0x759   : > { %1761 = vadd.xlane.f32.xlu1 %v1760_v0  ;;  %v1756_v1 = vpop.xlane.xlu1 %1755 }
 0x75a   : > { %2506 = vrsqrt.f32 %v1767_v63  ;;  %v1764_v2 = vmul.f32 0.015625, %v1756_v1 }
 0x75c   : > { %v1768_v55 = vadd.f32 1e-05, %v1764_v2 }
 0x75e   : > { %2508 = vrsqrt.f32 %v1768_v55 }
 0x764   : > { %v2507_v3 = vpop.eup %2506 }
 0x765   : > { %v1775_v5 = vmul.f32 %v2507_v3, %v1743_v45 }
 0x767   : > { %v1786_v7 = vmul.f32 %v2061_v4, %v1775_v5 }
 0x768   : > { %v2509_v8 = vpop.eup %2508 }
 0x769   : > { %v1797_v9 = vadd.f32 %v2062_v6, %v1786_v7  ;;  %v1776_v11 = vmul.f32 %v2509_v8, %v1744_v47 }
 0x76b   : > { %v1787_v12 = vmul.f32 %v2061_v4, %v1776_v11  ;;  %1801 = vst.msk [vmem:[%s3308_s23] sm:$0xff] %vm544_vm1, %v1797_v9 }
 0x76d   : > { %v1798_v14 = vadd.f32 %v2062_v6, %v1787_v12 }
 0x76f   : > { %1802 = vst.msk [vmem:[%s3308_s23 + $0x8] sm:$0xff] %vm544_vm1, %v1798_v14 }
 0x770   : > { %2655 = shalt.err (!%p2652_p0)
}
 0x771   : > { %s2656_s17 = scalar_lea.hbm %s3319_s6, 1024  ;;  %s2660_s16 = scalar_lea.hbm %s3422_s12, 2048 }
 0x772   : > { %p2657_p5 = scmp.ne.s32.totalorder %s3319_s6, %s2656_s17  ;;  %p2661_p7 = scmp.lt.u32.totalorder %s3319_s6, %s3422_s12 }
 0x773   : > { %p2662_p3 = scmp.lt.u32.totalorder %s2660_s16, %s2656_s17  ;;  %p2664_p4 = scmp.lt.u32.totalorder %s2656_s17, %s3319_s6 }
 0x774   : > { %p2658_p13 = pnand %p2657_p5, %p3463_p11 }
 0x775   : > { %p2663_p6 = por %p2662_p3, %p2661_p7 }
 0x776   : > { %p2659_p2 = pneg %p2658_p13 }
 0x777   : > { %p2665_p1 = por %p2664_p4, %p2663_p6 }
 0x779   : > { %p2666_p9 = pnand %p2665_p1, %p2659_p2 }
 0x77b   : > { %2669 = shalt.err (!%p2666_p9)
}
 0x77c   : > { %s2771_s2 = smov 128   ;;  %s2772_s30 = smov 8  }
 0x77d   : > { %2383 = dma.vmem_to_hbm [thread:$0]  (%p3463_p11), %s3321_s18, 1024, %s3319_s6, %s1811_s20, %s2771_s2, %s2771_s2, %s2772_s30  }
 0x77e   : > { %s2079_s18 = sshll.u32 %s2863_s29, 9  ;;  %s1825_s25 = sshll.u32 %s3308_s23, 4  ;;  %s3361_s25 = int_to_ptr.vmem [resolvable:$true] %s1825_s25 }
 0x77f   : > { %s3464_s15 = sld [smem:[#allocation29_spill]]  ;;  %s1806_s0 = scalar_lea.sflag [#allocation6], %s3063_s21 }
 0x780   : > { %s2670_s19 = scalar_lea.vmem %s3361_s25, 512  ;;  %s2773_s29 = smov [#allocation12]  }
 0x781   : > { %p2671_p10 = scmp.ne.s32.totalorder %s3361_s25, %s2670_s19  ;;  %s2674_s17 = sshll.u32 %s2773_s29, 4  ;;  %s2675_s17 = int_to_ptr.vmem [resolvable:$false] %s2674_s17 }
 0x782   : > { %s2676_s22 = scalar_lea.vmem %s2675_s17, 1024  ;;  %p2677_p0 = scmp.lt.s32.totalorder %s3361_s25, %s2675_s17 }
 0x783   : > { %p2672_p8 = pnand %p2671_p10, %p3463_p11  ;;  %p2678_p5 = scmp.lt.s32.totalorder %s2676_s22, %s2670_s19 }
 0x785   : > { %s3359_s13 = scalar_lea.hbm %s3464_s15, %s2079_s18  ;;  %p2673_p12 = pneg %p2672_p8 }
 0x786   : > { %p2679_p13 = por %p2678_p5, %p2677_p0 }
 0x788   : > { %p2680_p2 = pnand %p2679_p13, %p2673_p12 }
 0x7e2   : > { %v1759_v15 = vpop.xlane.xlu0 %1758 }
 0x7e3   : > { %v1765_v16 = vmul.f32 0.015625, %v1759_v15 }
 0x7e5   : > { %v1769_v17 = vadd.f32 1e-05, %v1765_v16 }
 0x7e6   : > { %v1762_v19 = vpop.xlane.xlu1 %1761 }
 0x7e7   : > { %2510 = vrsqrt.f32 %v1769_v17  ;;  %v1766_v20 = vmul.f32 0.015625, %v1762_v19 }
 0x7e9   : > { %v1770_v21 = vadd.f32 1e-05, %v1766_v20 }
 0x7eb   : > { %2512 = vrsqrt.f32 %v1770_v21 }
 0x7f1   : > { %v2511_v24 = vpop.eup %2510 }
 0x7f2   : > { %v1777_v26 = vmul.f32 %v2511_v24, %v3291_v54 }
 0x7f4   : > { %v1788_v27 = vmul.f32 %v2061_v4, %v1777_v26 }
 0x7f5   : > { %v2513_v28 = vpop.eup %2512 }
 0x7f6   : > { %v1799_v29 = vadd.f32 %v2062_v6, %v1788_v27  ;;  %v1778_v30 = vmul.f32 %v2513_v28, %v3295_v59 }
 0x7f8   : > { %1803 = vst.msk [vmem:[%s3308_s23 + $0x10] sm:$0xff] %vm544_vm1, %v1799_v29  ;;  %v1789_v31 = vmul.f32 %v2061_v4, %v1778_v30 }
 0x7fa   : > { %v1800_v32 = vadd.f32 %v2062_v6, %v1789_v31 }
 0x7fc   : > { %1804 = vst.msk [vmem:[%s3308_s23 + $0x18] sm:$0xff] %vm544_vm1, %v1800_v32 }
 0x7fd   : > { %2683 = shalt.err (!%p2680_p2)
}
 0x7fe   : > { %s2684_s23 = scalar_lea.hbm %s3359_s13, 512  ;;  %s2688_s7 = scalar_lea.hbm %s3464_s15, 1024 }
 0x7ff   : > { %p2685_p7 = scmp.ne.s32.totalorder %s3359_s13, %s2684_s23  ;;  %p2689_p4 = scmp.lt.u32.totalorder %s3359_s13, %s3464_s15 }
 0x800   : > { %p2690_p1 = scmp.lt.u32.totalorder %s2688_s7, %s2684_s23  ;;  %p2692_p10 = scmp.lt.u32.totalorder %s2684_s23, %s3359_s13 }
 0x801   : > { %p2686_p3 = pnand %p2685_p7, %p3463_p11 }
 0x802   : > { %p2691_p9 = por %p2690_p1, %p2689_p4 }
 0x803   : > { %p2687_p6 = pneg %p2686_p3 }
 0x804   : > { %p2693_p8 = por %p2692_p10, %p2691_p9 }
 0x806   : > { %p2694_p12 = pnand %p2693_p8, %p2687_p6 }
 0x808   : > { %2697 = shalt.err (!%p2694_p12)
}
 0x809   : > { %2382 = dma.vmem_to_hbm [thread:$0]  (%p3463_p11), %s3361_s25, 512, %s3359_s13, %s1806_s0, %s2771_s2, %s2771_s2, %s2772_s30  }
 0x80a PF: > { %s3465_s6 = sld [smem:[#allocation22_spill]]  ;;  %s3466_s20 = sld [smem:[#allocation24_spill]] }
 0x80b   : > { %p3468_p5 = scmp.ge.s32.totalorder %s2754_s28, 2 }
 0x810   : > { %s1857_s19 = sand.u32 1, %s3465_s6   ;;  %p3467_p0 = scmp.ne.s32.totalorder %s3466_s20, 0 }
 0x811   : > { %s1858_s29 = scalar_lea.sflag [#allocation6], %s1857_s19 }
 0x812   : > { %p2401_p13 = pnand %p3468_p5, %p3467_p0 }
 0x814   : > { %2733 = dma.done.wait (!%p2401_p13), %s1858_s29, 512  }
 0x815   : > { %2735 = vsyncadd (!%p2401_p13), %s1858_s29, 4294966784  ;;  %s1867_s24 = scalar_lea.sflag [#allocation14], %s1857_s19 }
 0x816   : > { %2737 = dma.done.wait (!%p2401_p13), %s1867_s24, 1024  }
 0x817   : > { %2739 = vsyncadd (!%p2401_p13), %s1867_s24, 4294966272  ;;  %s3469_s21 = sld [smem:[#allocation23_spill]]  ;;  %s3470_s27 = sld [smem:[#allocation25_spill]] }
 0x818   : > { %p39_p11 = scmp.ge.s32.totalorder %s2958_s14, 4   ;;  %s3471_s0 = smov %s2746_s26 }
 0x819   : > { %s3473_s28 = smov %s2958_s14 }
 0x81a   :  { %41 = sbr.rel (!%p39_p11) target bundleno = 27 (0x1b), region = 149 }
 0x81d   : > { %s3472_s26 = smov %s3469_s21 }
 0x821   :  { %1872 = vsyncpa [#allocation5], 1 }
 0x822   :  { %1874 = vsyncpa [#allocation5 + $0x1], 1 }
 0x823   :  { %1875 = vsyncpa [#allocation8], 1 }
 0x824   :  { %1877 = vsyncpa [#allocation8 + $0x1], 1 }
 0x825   :  { %1878 = vsyncpa [#allocation11], 1 }
 0x826   :  { %1879 = vsyncpa [#allocation6], 1 }
 0x827   :  { %1881 = vsyncpa [#allocation6 + $0x1], 1 }
 0x828   :  { %1882 = vsyncpa [#allocation14], 1 }
 0x829   :  { %1884 = vsyncpa [#allocation14 + $0x1], 1 }

</bundles_post_ra>
